<compile_context>
chip_gen: v5e
topology: v5e:2x2
jax: 0.10.0
libtpu: 0.0.40
codegen_flags: <defaults>
</compile_context>

<pallas_src>
import jax
import jax.numpy as jnp
from jax import lax
from jax.experimental import pallas as pl
from jax.experimental.pallas import tpu as pltpu

LANE = 128


def _round_up(v, m):
  return (v + m - 1) // m * m


def _pick_tq(np_total, target):
  """Largest multiple of 128 that divides np_total and is <= target."""
  best = LANE
  cap = min(target, np_total)
  c = LANE
  while c <= cap:
    if np_total % c == 0:
      best = c
    c += LANE
  return best


def _make_cafm_kernel(n_valid, tk, lsum_col, needs_mask):
  """Flash-attention CAFM kernel; static config captured by closure.

  lsum_col: padded column of V carrying 1.0 (so acc[:, lsum_col] == sum(p)),
            or None to fall back to an explicit l scratch buffer.
  """
  f32 = jnp.float32
  bf16 = jnp.bfloat16
  qk_dims = (((1,), (1,)), ((), ()))   # contract channel axis of both operands

  def kernel(q1_ref, q2_ref, k1_ref, v1_ref, k2_ref, v2_ref,
             xc_ref, yc_ref, wf1_ref, wf2_ref, bf_ref, gam_ref,
             out_ref,
             m1_s, acc1_s, m2_s, acc2_s, *l_scratch):
    ki = pl.program_id(2)
    nk = pl.num_programs(2)
    l1_s = l2_s = None
    if lsum_col is None:
      l1_s, l2_s = l_scratch

    @pl.when(ki == 0)
    def _init():
      m1_s[...] = jnp.full_like(m1_s, -jnp.inf)
      m2_s[...] = jnp.full_like(m2_s, -jnp.inf)
      acc1_s[...] = jnp.zeros_like(acc1_s)
      acc2_s[...] = jnp.zeros_like(acc2_s)
      if lsum_col is None:
        l1_s[...] = jnp.zeros_like(l1_s)
        l2_s[...] = jnp.zeros_like(l2_s)

    if needs_mask:
      # Only the spatially padded tail of the kv axis needs masking.
      col = ki * tk + lax.broadcasted_iota(jnp.int32, (1, tk), 1)
      invalid = col >= n_valid          # (1, TK); broadcasts over query rows
    else:
      invalid = None

    def online_step(q_bf, k_ref, v_ref, m_s, acc_s, l_s):
      s = lax.dot_general(q_bf, k_ref[0], qk_dims, preferred_element_type=f32)
      if invalid is not None:
        s = jnp.where(invalid, -jnp.inf, s)
      m_new = jnp.maximum(m_s[...], jnp.max(s, axis=-1, keepdims=True))
      alpha = jnp.exp(m_s[...] - m_new)
      # f32 exp (generation-agnostic; bf16 exp would double EUP rate on v6e+).
      p = jnp.exp(s - m_new)
      if l_s is not None:
        l_s[...] = alpha * l_s[...] + jnp.sum(p, axis=-1, keepdims=True)
      acc_s[...] = alpha * acc_s[...] + jnp.dot(
          p.astype(bf16), v_ref[0], preferred_element_type=f32)
      m_s[...] = m_new

    online_step(q1_ref[0], k1_ref, v1_ref, m1_s, acc1_s, l1_s)  # _CAFM1(x, y)
    online_step(q2_ref[0], k2_ref, v2_ref, m2_s, acc2_s, l2_s)  # _CAFM2(y, x)

    @pl.when(ki == nk - 1)
    def _finalize():
      g1 = gam_ref[0]
      g2 = gam_ref[1]
      a1 = acc1_s[...]
      a2 = acc2_s[...]
      if lsum_col is not None:
        l1 = a1[:, lsum_col:lsum_col + 1]   # sum(p) rode the ones-column of V
        l2 = a2[:, lsum_col:lsum_col + 1]
      else:
        l1 = l1_s[...]
        l2 = l2_s[...]
      out1 = a1 * pl.reciprocal(l1, approx=True)
      out2 = a2 * pl.reciprocal(l2, approx=True)
      l2g = xc_ref[0] + g1 * out1        # local2global = X + gamma1 * attn1
      g2l = yc_ref[0] + g2 * out2        # global2local = Y + gamma2 * attn2
      # fuse_conv over the channel concat == split-weight matmul sum.
      fuse = (jnp.dot(l2g.astype(bf16), wf1_ref[...], preferred_element_type=f32)
              + jnp.dot(g2l.astype(bf16), wf2_ref[...], preferred_element_type=f32)
              + bf_ref[...])
      out_ref[0] = fuse.astype(out_ref.dtype)

  return kernel


def cafm_pallas(x_nchw, y_nchw, p, *, tq_target=512, tk_target=512):
  """CAFM forward. x: transformer branch (B, Ct, H, W); y: cnn branch (B, Cc, H, W).

  Returns fused features in NCHW layout (B, Cf, H, W), matching the module.
  """
  f32 = jnp.float32
  bf16 = jnp.bfloat16
  B, Ct, H, W = x_nchw.shape
  _, Cc, _, _ = y_nchw.shape
  Cf = p["wt"].shape[1]
  N = H * W
  Cfp = _round_up(Cf, LANE)

  # Tiling: TK is a multiple of 128, N is padded up to a multiple of TK
  # (padded keys masked with -inf in-kernel); TQ is the largest 128-multiple
  # divisor of Np under the target. Double-buffered working set is only a few
  # MiB at these tiles, so the default scoped-VMEM limit is ample on all gens.
  TK = min(_round_up(tk_target, LANE), _round_up(N, LANE))
  Np = _round_up(N, TK)
  TQ = _pick_tq(Np, tq_target)
  needs_mask = Np != N
  lsum_col = Cf if Cf < Cfp else None   # spare lane to carry sum(p)

  # NCHW -> (B, N, C) channels-last; cast to bf16 *before* the transpose so
  # the layout-change HBM pass moves half the bytes.  Spatial means in f32
  # straight from the NCHW tensor.
  # TODO(synk): producing channels-last activations upstream would remove
  # these transposes entirely.
  x_nc = jnp.transpose(x_nchw.astype(bf16), (0, 2, 3, 1)).reshape(B, N, Ct)
  y_nc = jnp.transpose(y_nchw.astype(bf16), (0, 2, 3, 1)).reshape(B, N, Cc)
  xm_c = jnp.mean(x_nchw.astype(f32), axis=(2, 3))[:, None, :]   # (B,1,Ct)
  ym_c = jnp.mean(y_nchw.astype(f32), axis=(2, 3))[:, None, :]

  def mm(a, w):    # bf16 operands, f32 accumulation on the MXU
    return jnp.einsum("bnc,cf->bnf", a.astype(bf16), w.astype(bf16),
                      preferred_element_type=f32)

  # ---- per-batch prologue (plain XLA, O(N*C^2)): 1x1 convs + projections ----
  Xc = mm(x_nc, p["wt"]) + p["bt"]                   # conv_trans(x), f32
  Yc = mm(y_nc, p["wc"]) + p["bc"]                   # conv_cnn(y),   f32
  Xm = xm_c @ p["wt"].astype(f32) + p["bt"]          # mean_N(conv_trans(x))
  Ym = ym_c @ p["wc"].astype(f32) + p["bc"]
  # conv_query / conv_key biases cancel against the spatial-mean subtraction.
  Q1 = mm(Xc - Xm, p["wq1"]).astype(bf16)
  K1 = mm(Yc - Ym, p["wk1"]).astype(bf16)
  V1 = mm(Yc, p["wv1"]).astype(bf16)
  Q2 = mm(Yc - Ym, p["wq2"]).astype(bf16)
  K2 = mm(Xc - Xm, p["wk2"]).astype(bf16)
  V2 = mm(Xc, p["wv2"]).astype(bf16)

  pad_nc = lambda t: jnp.pad(t, ((0, 0), (0, Np - N), (0, Cfp - Cf)))

  def pad_v(t):
    t = pad_nc(t)
    if lsum_col is not None:
      # Spare padded column carries 1.0 so the PV matmul also yields sum(p).
      t = t.at[:, :, lsum_col].set(jnp.asarray(1.0, t.dtype))
    return t

  Q1p, Q2p, K1p, K2p = pad_nc(Q1), pad_nc(Q2), pad_nc(K1), pad_nc(K2)
  V1p, V2p = pad_v(V1), pad_v(V2)
  Xcp, Ycp = pad_nc(Xc), pad_nc(Yc)                  # f32 residual streams

  def pad_w(w):
    return jnp.pad(w, ((0, Cfp - w.shape[0]),
                       (0, Cfp - w.shape[1]))).astype(bf16)

  wf1 = pad_w(p["wf"][:Cf])
  wf2 = pad_w(p["wf"][Cf:])
  bfb = jnp.pad(p["bf"], ((0, 0), (0, Cfp - Cf))).astype(f32)
  gammas = jnp.stack([p["g1"].reshape(()), p["g2"].reshape(())]).astype(f32)

  q_spec = lambda: pl.BlockSpec((1, TQ, Cfp), lambda b, qi, ki: (b, qi, 0))
  k_spec = lambda: pl.BlockSpec((1, TK, Cfp), lambda b, qi, ki: (b, ki, 0))

  def full_spec(shape):
    nd = len(shape)
    return pl.BlockSpec(shape, lambda b, qi, ki, _nd=nd: (0,) * _nd)

  in_specs = [
      q_spec(), q_spec(),                       # Q1, Q2 (query rows)
      k_spec(), k_spec(), k_spec(), k_spec(),   # K1, V1, K2, V2 (kv rows)
      q_spec(), q_spec(),                       # Xc, Yc residual streams
      full_spec((Cfp, Cfp)), full_spec((Cfp, Cfp)), full_spec((1, Cfp)),
      pl.BlockSpec(memory_space=pltpu.MemorySpace.SMEM),   # gammas
  ]

  scratch = [
      pltpu.VMEM((TQ, 1), f32),     # m1
      pltpu.VMEM((TQ, Cfp), f32),   # acc1 (column Cf carries l1)
      pltpu.VMEM((TQ, 1), f32),     # m2
      pltpu.VMEM((TQ, Cfp), f32),   # acc2 (column Cf carries l2)
  ]
  if lsum_col is None:
    scratch += [pltpu.VMEM((TQ, 1), f32), pltpu.VMEM((TQ, 1), f32)]  # l1, l2

  out = pl.pallas_call(
      _make_cafm_kernel(N, TK, lsum_col, needs_mask),
      out_shape=jax.ShapeDtypeStruct((B, Np, Cfp), f32),
      grid_spec=pltpu.PrefetchScalarGridSpec(
          num_scalar_prefetch=0,
          grid=(B, Np // TQ, Np // TK),
          in_specs=in_specs,
          out_specs=pl.BlockSpec((1, TQ, Cfp), lambda b, qi, ki: (b, qi, 0)),
          scratch_shapes=scratch),
      compiler_params=pltpu.CompilerParams(
          dimension_semantics=("parallel", "parallel", "arbitrary")),
  )(Q1p, Q2p, K1p, V1p, K2p, V2p, Xcp, Ycp, wf1, wf2, bfb, gammas)

  # Drop spatial/channel padding and return to NCHW.
  return out[:, :N, :Cf].reshape(B, H, W, Cf).transpose(0, 3, 1, 2)


# ------------------------- pure-JAX reference (mirrors PyTorch NCHW ops) ----
def cafm_reference(x_nchw, y_nchw, p):
    def conv1x1(t, w_io, b=None):          # w_io: (Cin, Cout)
        out = jnp.einsum("bchw,co->bohw", t, w_io)
        if b is not None:
            out = out + b.reshape(1, -1, 1, 1)
        return out

    def cafm_block(x, y, wq, bq, wk, bk, wv, gamma):
        Bn, C, Hh, Ww = x.shape
        value = conv1x1(y, wv).reshape(Bn, C, -1)
        query = conv1x1(x, wq, bq).reshape(Bn, C, -1)
        key_ = conv1x1(y, wk, bk).reshape(Bn, C, -1)
        key_ = key_ - key_.mean(2, keepdims=True)
        query = query - query.mean(2, keepdims=True)
        sim = jnp.einsum("bcn,bcm->bnm", query, key_)
        sim = jax.nn.softmax(sim, axis=2)
        out = jnp.einsum("bnm,bcm->bnc", sim, value)
        out = out.transpose(0, 2, 1).reshape(Bn, C, Hh, Ww)
        return gamma * out

    X = conv1x1(x_nchw, p["wt"], p["bt"].reshape(-1))
    Y = conv1x1(y_nchw, p["wc"], p["bc"].reshape(-1))
    l2g = X + cafm_block(X, Y, p["wq1"], p["bq1"].reshape(-1),
                         p["wk1"], p["bk1"].reshape(-1), p["wv1"], p["g1"][0, 0])
    g2l = Y + cafm_block(Y, X, p["wq2"], p["bq2"].reshape(-1),
                         p["wk2"], p["bk2"].reshape(-1), p["wv2"], p["g2"][0, 0])
    cat = jnp.concatenate([l2g, g2l], axis=1)
    return conv1x1(cat, p["wf"], p["bf"].reshape(-1))


if __name__ == "__main__":
    B, Ct, Cc, Cf, H, W = 2, 4, 6, 8, 8, 8

    key = jax.random.PRNGKey(0)
    ks = jax.random.split(key, 24)
    s = 0.2  # weight scale to keep activations moderate

    # Conv weights stored as (Cin, Cout) (== squeezed PyTorch weight transposed).
    params = {
        "wt": s * jax.random.normal(ks[0], (Ct, Cf), jnp.float32),
        "bt": s * jax.random.normal(ks[1], (1, Cf), jnp.float32),
        "wc": s * jax.random.normal(ks[2], (Cc, Cf), jnp.float32),
        "bc": s * jax.random.normal(ks[3], (1, Cf), jnp.float32),
        "wq1": s * jax.random.normal(ks[4], (Cf, Cf), jnp.float32),
        "bq1": s * jax.random.normal(ks[5], (1, Cf), jnp.float32),
        "wk1": s * jax.random.normal(ks[6], (Cf, Cf), jnp.float32),
        "bk1": s * jax.random.normal(ks[7], (1, Cf), jnp.float32),
        "wv1": s * jax.random.normal(ks[8], (Cf, Cf), jnp.float32),
        # PyTorch inits gamma = 0; use nonzero so the attention path is exercised.
        "g1": jnp.full((1, 1), 0.5, jnp.float32),
        "wq2": s * jax.random.normal(ks[9], (Cf, Cf), jnp.float32),
        "bq2": s * jax.random.normal(ks[10], (1, Cf), jnp.float32),
        "wk2": s * jax.random.normal(ks[11], (Cf, Cf), jnp.float32),
        "bk2": s * jax.random.normal(ks[12], (1, Cf), jnp.float32),
        "wv2": s * jax.random.normal(ks[13], (Cf, Cf), jnp.float32),
        "g2": jnp.full((1, 1), 0.25, jnp.float32),
        "wf": s * jax.random.normal(ks[14], (2 * Cf, Cf), jnp.float32),
        "bf": s * jax.random.normal(ks[15], (1, Cf), jnp.float32),
    }

    x = jax.random.normal(ks[16], (B, Ct, H, W), jnp.float32)   # transformer branch
    y = jax.random.normal(ks[17], (B, Cc, H, W), jnp.float32)   # cnn branch

    out_kernel = jax.block_until_ready(jax.jit(cafm_pallas)(x, y, params))  # NCHW

    ref = cafm_reference(x, y, params)                                      # NCHW
    assert out_kernel.shape == ref.shape, (out_kernel.shape, ref.shape)
    max_err = float(jnp.max(jnp.abs(out_kernel - ref)))
    # bf16 MXU inputs + approx reciprocal shift results at the ~1e-3 level.
    assert jnp.allclose(out_kernel, ref, rtol=2e-2, atol=2e-2), max_err

    print("KERNEL_OK")
</pallas_src>

<mosaic_0001>
module attributes {stable_mosaic.version = 11 : i64} {
  func.func @kernel(%arg0: i32, %arg1: i32, %arg2: i32, %arg3: memref<1x128x128xbf16, #tpu.memory_space<vmem>>, %arg4: memref<1x128x128xbf16, #tpu.memory_space<vmem>>, %arg5: memref<1x128x128xbf16, #tpu.memory_space<vmem>>, %arg6: memref<1x128x128xbf16, #tpu.memory_space<vmem>>, %arg7: memref<1x128x128xbf16, #tpu.memory_space<vmem>>, %arg8: memref<1x128x128xbf16, #tpu.memory_space<vmem>>, %arg9: memref<1x128x128xf32, #tpu.memory_space<vmem>>, %arg10: memref<1x128x128xf32, #tpu.memory_space<vmem>>, %arg11: memref<128x128xbf16, #tpu.memory_space<vmem>>, %arg12: memref<128x128xbf16, #tpu.memory_space<vmem>>, %arg13: memref<1x128xf32, #tpu.memory_space<vmem>>, %arg14: memref<2xf32, #tpu.memory_space<smem>>, %arg15: memref<1x128x128xf32, #tpu.memory_space<vmem>>, %arg16: memref<128x1xf32, #tpu.memory_space<vmem>>, %arg17: memref<128x128xf32, #tpu.memory_space<vmem>>, %arg18: memref<128x1xf32, #tpu.memory_space<vmem>>, %arg19: memref<128x128xf32, #tpu.memory_space<vmem>>) attributes {dimension_semantics = [#tpu.dimension_semantics<parallel>, #tpu.dimension_semantics<parallel>, #tpu.dimension_semantics<arbitrary>], iteration_bounds = array<i64: 2, 1, 1>, scalar_prefetch = 0 : i64, scratch_operands = 4 : i64, tpu.core_type = #tpu.core_type<tc>, window_params = [{transform_indices = @transform_0, window_bounds = array<i64: 1, 128, 128>}, {transform_indices = @transform_1, window_bounds = array<i64: 1, 128, 128>}, {transform_indices = @transform_2, window_bounds = array<i64: 1, 128, 128>}, {transform_indices = @transform_3, window_bounds = array<i64: 1, 128, 128>}, {transform_indices = @transform_4, window_bounds = array<i64: 1, 128, 128>}, {transform_indices = @transform_5, window_bounds = array<i64: 1, 128, 128>}, {transform_indices = @transform_6, window_bounds = array<i64: 1, 128, 128>}, {transform_indices = @transform_7, window_bounds = array<i64: 1, 128, 128>}, {pipeline_mode = #tpu.pipeline_mode<synchronous>, transform_indices = @transform_8, window_bounds = array<i64: 128, 128>}, {pipeline_mode = #tpu.pipeline_mode<synchronous>, transform_indices = @transform_9, window_bounds = array<i64: 128, 128>}, {pipeline_mode = #tpu.pipeline_mode<synchronous>, transform_indices = @transform_10, window_bounds = array<i64: 1, 128>}, {transform_indices = @transform_11, window_bounds = array<i64: 2>}, {transform_indices = @transform_12, window_bounds = array<i64: 1, 128, 128>}]} {
    %c0_i32 = arith.constant 0 : i32
    %0 = arith.cmpi eq, %arg2, %c0_i32 : i32
    %1 = arith.extui %0 : i1 to i32
    %c0_i32_0 = arith.constant 0 : i32
    %2 = arith.cmpi ne, %1, %c0_i32_0 : i32
    scf.if %2 {
      %cst_47 = arith.constant 0xFF800000 : f32
      %70 = vector.broadcast %cst_47 : f32 to vector<128x1xf32>
      %c0_48 = arith.constant 0 : index
      %c0_49 = arith.constant 0 : index
      %71 = vector.load %arg16[%c0_48, %c0_49] : memref<128x1xf32, #tpu.memory_space<vmem>>, vector<128x1xf32>
      tpu.vector_store %arg16[%c0_48, %c0_49], %70 {strides = array<i32>} : memref<128x1xf32, #tpu.memory_space<vmem>>, vector<128x1xf32>,
      %cst_50 = arith.constant 0xFF800000 : f32
      %72 = vector.broadcast %cst_50 : f32 to vector<128x1xf32>
      %c0_51 = arith.constant 0 : index
      %c0_52 = arith.constant 0 : index
      %73 = vector.load %arg18[%c0_51, %c0_52] : memref<128x1xf32, #tpu.memory_space<vmem>>, vector<128x1xf32>
      tpu.vector_store %arg18[%c0_51, %c0_52], %72 {strides = array<i32>} : memref<128x1xf32, #tpu.memory_space<vmem>>, vector<128x1xf32>,
      %cst_53 = arith.constant 0.000000e+00 : f32
      %74 = vector.broadcast %cst_53 : f32 to vector<128x128xf32>
      %c0_54 = arith.constant 0 : index
      %c0_55 = arith.constant 0 : index
      %75 = vector.load %arg17[%c0_54, %c0_55] : memref<128x128xf32, #tpu.memory_space<vmem>>, vector<128x128xf32>
      tpu.vector_store %arg17[%c0_54, %c0_55], %74 {strides = array<i32>} : memref<128x128xf32, #tpu.memory_space<vmem>>, vector<128x128xf32>,
      %cst_56 = arith.constant 0.000000e+00 : f32
      %76 = vector.broadcast %cst_56 : f32 to vector<128x128xf32>
      %c0_57 = arith.constant 0 : index
      %c0_58 = arith.constant 0 : index
      %77 = vector.load %arg19[%c0_57, %c0_58] : memref<128x128xf32, #tpu.memory_space<vmem>>, vector<128x128xf32>
      tpu.vector_store %arg19[%c0_57, %c0_58], %76 {strides = array<i32>} : memref<128x128xf32, #tpu.memory_space<vmem>>, vector<128x128xf32>,
    } else {
    }
    %c128_i32 = arith.constant 128 : i32
    %3 = arith.muli %arg2, %c128_i32 : i32
    %4 = tpu.iota {dimensions = array<i32: 1>} : vector<1x128xi32>
    %5 = vector.broadcast %3 : i32 to vector<1x128xi32>
    %6 = arith.addi %5, %4 : vector<1x128xi32>
    %c64_i32 = arith.constant 64 : i32
    %7 = vector.broadcast %c64_i32 : i32 to vector<1x128xi32>
    %8 = arith.cmpi sge, %6, %7 : vector<1x128xi32>
    %c0 = arith.constant 0 : index
    %c0_1 = arith.constant 0 : index
    %c0_2 = arith.constant 0 : index
    %9 = vector.load %arg3[%c0, %c0_1, %c0_2] : memref<1x128x128xbf16, #tpu.memory_space<vmem>>, vector<1x128x128xbf16>
    %10 = vector.shape_cast %9 : vector<1x128x128xbf16> to vector<128x128xbf16>
    %c0_3 = arith.constant 0 : index
    %c0_4 = arith.constant 0 : index
    %c0_5 = arith.constant 0 : index
    %11 = vector.load %arg5[%c0_3, %c0_4, %c0_5] : memref<1x128x128xbf16, #tpu.memory_space<vmem>>, vector<1x128x128xbf16>
    %12 = vector.shape_cast %11 : vector<1x128x128xbf16> to vector<128x128xbf16>
    %cst = arith.constant dense<0.000000e+00> : vector<128x128xf32>
    %13 = tpu.matmul %10, %12, %cst {dimension_numbers = #tpu.dot_dimension_numbers<[1], [1], [0], [0], [0, 0, 1, 0], [], []>} : vector<128x128xbf16>, vector<128x128xbf16>, vector<128x128xf32> -> vector<128x128xf32>
    %cst_6 = arith.constant 0xFF800000 : f32
    %14 = vector.shape_cast %8 : vector<1x128xi1> to vector<1x128xi1>
    %15 = vector.broadcast %14 : vector<1x128xi1> to vector<128x128xi1>
    %16 = vector.broadcast %cst_6 : f32 to vector<128x128xf32>
    %17 = arith.select %15, %16, %13 : vector<128x128xi1>, vector<128x128xf32>
    %c0_7 = arith.constant 0 : index
    %c0_8 = arith.constant 0 : index
    %18 = vector.load %arg16[%c0_7, %c0_8] : memref<128x1xf32, #tpu.memory_space<vmem>>, vector<128x1xf32>
    %cst_9 = arith.constant dense<0xFF800000> : vector<128xf32>
    %19 = vector.multi_reduction <maximumf>, %17, %cst_9 [1] : vector<128x128xf32> to vector<128xf32>
    %20 = vector.shape_cast %19 : vector<128xf32> to vector<128x1xf32>
    %21 = arith.maximumf %18, %20 : vector<128x1xf32>
    %c0_10 = arith.constant 0 : index
    %c0_11 = arith.constant 0 : index
    %22 = vector.load %arg16[%c0_10, %c0_11] : memref<128x1xf32, #tpu.memory_space<vmem>>, vector<128x1xf32>
    %23 = arith.subf %22, %21 : vector<128x1xf32>
    %24 = math.exp %23 : vector<128x1xf32>
    %25 = vector.broadcast %21 : vector<128x1xf32> to vector<128x128xf32>
    %26 = arith.subf %17, %25 : vector<128x128xf32>
    %27 = math.exp %26 : vector<128x128xf32>
    %c0_12 = arith.constant 0 : index
    %c0_13 = arith.constant 0 : index
    %28 = vector.load %arg17[%c0_12, %c0_13] : memref<128x128xf32, #tpu.memory_space<vmem>>, vector<128x128xf32>
    %29 = vector.broadcast %24 : vector<128x1xf32> to vector<128x128xf32>
    %30 = arith.mulf %29, %28 : vector<128x128xf32>
    %31 = arith.truncf %27 : vector<128x128xf32> to vector<128x128xbf16>
    %c0_14 = arith.constant 0 : index
    %c0_15 = arith.constant 0 : index
    %c0_16 = arith.constant 0 : index
    %32 = vector.load %arg6[%c0_14, %c0_15, %c0_16] : memref<1x128x128xbf16, #tpu.memory_space<vmem>>, vector<1x128x128xbf16>
    %33 = vector.shape_cast %32 : vector<1x128x128xbf16> to vector<128x128xbf16>
    %cst_17 = arith.constant dense<0.000000e+00> : vector<128x128xf32>
    %34 = tpu.matmul %31, %33, %cst_17 {dimension_numbers = #tpu.dot_dimension_numbers<[1], [0], [0], [1], [0, 0, 1, 1], [], []>} : vector<128x128xbf16>, vector<128x128xbf16>, vector<128x128xf32> -> vector<128x128xf32>
    %35 = arith.addf %30, %34 : vector<128x128xf32>
    %c0_18 = arith.constant 0 : index
    %c0_19 = arith.constant 0 : index
    %36 = vector.load %arg17[%c0_18, %c0_19] : memref<128x128xf32, #tpu.memory_space<vmem>>, vector<128x128xf32>
    tpu.vector_store %arg17[%c0_18, %c0_19], %35 {strides = array<i32>} : memref<128x128xf32, #tpu.memory_space<vmem>>, vector<128x128xf32>,
    %c0_20 = arith.constant 0 : index
    %c0_21 = arith.constant 0 : index
    %37 = vector.load %arg16[%c0_20, %c0_21] : memref<128x1xf32, #tpu.memory_space<vmem>>, vector<128x1xf32>
    tpu.vector_store %arg16[%c0_20, %c0_21], %21 {strides = array<i32>} : memref<128x1xf32, #tpu.memory_space<vmem>>, vector<128x1xf32>,
    %c0_22 = arith.constant 0 : index
    %c0_23 = arith.constant 0 : index
    %c0_24 = arith.constant 0 : index
    %38 = vector.load %arg4[%c0_22, %c0_23, %c0_24] : memref<1x128x128xbf16, #tpu.memory_space<vmem>>, vector<1x128x128xbf16>
    %39 = vector.shape_cast %38 : vector<1x128x128xbf16> to vector<128x128xbf16>
    %c0_25 = arith.constant 0 : index
    %c0_26 = arith.constant 0 : index
    %c0_27 = arith.constant 0 : index
    %40 = vector.load %arg7[%c0_25, %c0_26, %c0_27] : memref<1x128x128xbf16, #tpu.memory_space<vmem>>, vector<1x128x128xbf16>
    %41 = vector.shape_cast %40 : vector<1x128x128xbf16> to vector<128x128xbf16>
    %cst_28 = arith.constant dense<0.000000e+00> : vector<128x128xf32>
    %42 = tpu.matmul %39, %41, %cst_28 {dimension_numbers = #tpu.dot_dimension_numbers<[1], [1], [0], [0], [0, 0, 1, 0], [], []>} : vector<128x128xbf16>, vector<128x128xbf16>, vector<128x128xf32> -> vector<128x128xf32>
    %cst_29 = arith.constant 0xFF800000 : f32
    %43 = vector.shape_cast %8 : vector<1x128xi1> to vector<1x128xi1>
    %44 = vector.broadcast %43 : vector<1x128xi1> to vector<128x128xi1>
    %45 = vector.broadcast %cst_29 : f32 to vector<128x128xf32>
    %46 = arith.select %44, %45, %42 : vector<128x128xi1>, vector<128x128xf32>
    %c0_30 = arith.constant 0 : index
    %c0_31 = arith.constant 0 : index
    %47 = vector.load %arg18[%c0_30, %c0_31] : memref<128x1xf32, #tpu.memory_space<vmem>>, vector<128x1xf32>
    %cst_32 = arith.constant dense<0xFF800000> : vector<128xf32>
    %48 = vector.multi_reduction <maximumf>, %46, %cst_32 [1] : vector<128x128xf32> to vector<128xf32>
    %49 = vector.shape_cast %48 : vector<128xf32> to vector<128x1xf32>
    %50 = arith.maximumf %47, %49 : vector<128x1xf32>
    %c0_33 = arith.constant 0 : index
    %c0_34 = arith.constant 0 : index
    %51 = vector.load %arg18[%c0_33, %c0_34] : memref<128x1xf32, #tpu.memory_space<vmem>>, vector<128x1xf32>
    %52 = arith.subf %51, %50 : vector<128x1xf32>
    %53 = math.exp %52 : vector<128x1xf32>
    %54 = vector.broadcast %50 : vector<128x1xf32> to vector<128x128xf32>
    %55 = arith.subf %46, %54 : vector<128x128xf32>
    %56 = math.exp %55 : vector<128x128xf32>
    %c0_35 = arith.constant 0 : index
    %c0_36 = arith.constant 0 : index
    %57 = vector.load %arg19[%c0_35, %c0_36] : memref<128x128xf32, #tpu.memory_space<vmem>>, vector<128x128xf32>
    %58 = vector.broadcast %53 : vector<128x1xf32> to vector<128x128xf32>
    %59 = arith.mulf %58, %57 : vector<128x128xf32>
    %60 = arith.truncf %56 : vector<128x128xf32> to vector<128x128xbf16>
    %c0_37 = arith.constant 0 : index
    %c0_38 = arith.constant 0 : index
    %c0_39 = arith.constant 0 : index
    %61 = vector.load %arg8[%c0_37, %c0_38, %c0_39] : memref<1x128x128xbf16, #tpu.memory_space<vmem>>, vector<1x128x128xbf16>
    %62 = vector.shape_cast %61 : vector<1x128x128xbf16> to vector<128x128xbf16>
    %cst_40 = arith.constant dense<0.000000e+00> : vector<128x128xf32>
    %63 = tpu.matmul %60, %62, %cst_40 {dimension_numbers = #tpu.dot_dimension_numbers<[1], [0], [0], [1], [0, 0, 1, 1], [], []>} : vector<128x128xbf16>, vector<128x128xbf16>, vector<128x128xf32> -> vector<128x128xf32>
    %64 = arith.addf %59, %63 : vector<128x128xf32>
    %c0_41 = arith.constant 0 : index
    %c0_42 = arith.constant 0 : index
    %65 = vector.load %arg19[%c0_41, %c0_42] : memref<128x128xf32, #tpu.memory_space<vmem>>, vector<128x128xf32>
    tpu.vector_store %arg19[%c0_41, %c0_42], %64 {strides = array<i32>} : memref<128x128xf32, #tpu.memory_space<vmem>>, vector<128x128xf32>,
    %c0_43 = arith.constant 0 : index
    %c0_44 = arith.constant 0 : index
    %66 = vector.load %arg18[%c0_43, %c0_44] : memref<128x1xf32, #tpu.memory_space<vmem>>, vector<128x1xf32>
    tpu.vector_store %arg18[%c0_43, %c0_44], %50 {strides = array<i32>} : memref<128x1xf32, #tpu.memory_space<vmem>>, vector<128x1xf32>,
    %c0_i32_45 = arith.constant 0 : i32
    %67 = arith.cmpi eq, %arg2, %c0_i32_45 : i32
    %68 = arith.extui %67 : i1 to i32
    %c0_i32_46 = arith.constant 0 : i32
    %69 = arith.cmpi ne, %68, %c0_i32_46 : i32
    scf.if %69 {
      %c0_47 = arith.constant 0 : index
      %70 = memref.load %arg14[%c0_47] : memref<2xf32, #tpu.memory_space<smem>>
      %c1 = arith.constant 1 : index
      %71 = memref.load %arg14[%c1] : memref<2xf32, #tpu.memory_space<smem>>
      %c0_48 = arith.constant 0 : index
      %c0_49 = arith.constant 0 : index
      %72 = vector.load %arg17[%c0_48, %c0_49] : memref<128x128xf32, #tpu.memory_space<vmem>>, vector<128x128xf32>
      %c0_50 = arith.constant 0 : index
      %c0_51 = arith.constant 0 : index
      %73 = vector.load %arg19[%c0_50, %c0_51] : memref<128x128xf32, #tpu.memory_space<vmem>>, vector<128x128xf32>
      %74 = vector.extract_strided_slice %72 {offsets = [0, 8], sizes = [128, 1], strides = [1, 1]} : vector<128x128xf32> to vector<128x1xf32>
      %75 = vector.extract_strided_slice %73 {offsets = [0, 8], sizes = [128, 1], strides = [1, 1]} : vector<128x128xf32> to vector<128x1xf32>
      %76 = tpu.reciprocal %74 {approx = true} : vector<128x1xf32> -> vector<128x1xf32>
      %77 = vector.broadcast %76 : vector<128x1xf32> to vector<128x128xf32>
      %78 = arith.mulf %72, %77 : vector<128x128xf32>
      %79 = tpu.reciprocal %75 {approx = true} : vector<128x1xf32> -> vector<128x1xf32>
      %80 = vector.broadcast %79 : vector<128x1xf32> to vector<128x128xf32>
      %81 = arith.mulf %73, %80 : vector<128x128xf32>
      %c0_52 = arith.constant 0 : index
      %c0_53 = arith.constant 0 : index
      %c0_54 = arith.constant 0 : index
      %82 = vector.load %arg9[%c0_52, %c0_53, %c0_54] : memref<1x128x128xf32, #tpu.memory_space<vmem>>, vector<1x128x128xf32>
      %83 = vector.shape_cast %82 : vector<1x128x128xf32> to vector<128x128xf32>
      %84 = vector.broadcast %70 : f32 to vector<128x128xf32>
      %85 = arith.mulf %84, %78 : vector<128x128xf32>
      %86 = arith.addf %83, %85 : vector<128x128xf32>
      %c0_55 = arith.constant 0 : index
      %c0_56 = arith.constant 0 : index
      %c0_57 = arith.constant 0 : index
      %87 = vector.load %arg10[%c0_55, %c0_56, %c0_57] : memref<1x128x128xf32, #tpu.memory_space<vmem>>, vector<1x128x128xf32>
      %88 = vector.shape_cast %87 : vector<1x128x128xf32> to vector<128x128xf32>
      %89 = vector.broadcast %71 : f32 to vector<128x128xf32>
      %90 = arith.mulf %89, %81 : vector<128x128xf32>
      %91 = arith.addf %88, %90 : vector<128x128xf32>
      %92 = arith.truncf %86 : vector<128x128xf32> to vector<128x128xbf16>
      %c0_58 = arith.constant 0 : index
      %c0_59 = arith.constant 0 : index
      %93 = vector.load %arg11[%c0_58, %c0_59] : memref<128x128xbf16, #tpu.memory_space<vmem>>, vector<128x128xbf16>
      %cst_60 = arith.constant dense<0.000000e+00> : vector<128x128xf32>
      %94 = tpu.matmul %92, %93, %cst_60 {dimension_numbers = #tpu.dot_dimension_numbers<[1], [0], [0], [1], [0, 0, 1, 1], [], []>} : vector<128x128xbf16>, vector<128x128xbf16>, vector<128x128xf32> -> vector<128x128xf32>
      %95 = arith.truncf %91 : vector<128x128xf32> to vector<128x128xbf16>
      %c0_61 = arith.constant 0 : index
      %c0_62 = arith.constant 0 : index
      %96 = vector.load %arg12[%c0_61, %c0_62] : memref<128x128xbf16, #tpu.memory_space<vmem>>, vector<128x128xbf16>
      %cst_63 = arith.constant dense<0.000000e+00> : vector<128x128xf32>
      %97 = tpu.matmul %95, %96, %cst_63 {dimension_numbers = #tpu.dot_dimension_numbers<[1], [0], [0], [1], [0, 0, 1, 1], [], []>} : vector<128x128xbf16>, vector<128x128xbf16>, vector<128x128xf32> -> vector<128x128xf32>
      %98 = arith.addf %94, %97 : vector<128x128xf32>
      %c0_64 = arith.constant 0 : index
      %c0_65 = arith.constant 0 : index
      %99 = vector.load %arg13[%c0_64, %c0_65] : memref<1x128xf32, #tpu.memory_space<vmem>>, vector<1x128xf32>
      %100 = vector.broadcast %99 : vector<1x128xf32> to vector<128x128xf32>
      %101 = arith.addf %98, %100 : vector<128x128xf32>
      %c0_66 = arith.constant 0 : index
      %c0_67 = arith.constant 0 : index
      %c0_68 = arith.constant 0 : index
      %102 = vector.load %arg15[%c0_66, %c0_67, %c0_68] : memref<1x128x128xf32, #tpu.memory_space<vmem>>, vector<1x128x128xf32>
      %103 = vector.shape_cast %102 : vector<1x128x128xf32> to vector<128x128xf32>
      %104 = vector.shape_cast %101 : vector<128x128xf32> to vector<1x128x128xf32>
      tpu.vector_store %arg15[%c0_66, %c0_67, %c0_68], %104 {strides = array<i32>} : memref<1x128x128xf32, #tpu.memory_space<vmem>>, vector<1x128x128xf32>,
    } else {
    }
    return
  }
  func.func @transform_0(%arg0: i32, %arg1: i32, %arg2: i32) -> (i32, i32, i32) {
    %c0_i32 = arith.constant 0 : i32
    %c0_i32_0 = arith.constant 0 : i32
    return %arg0, %arg1, %c0_i32 : i32, i32, i32
  }
  func.func @transform_1(%arg0: i32, %arg1: i32, %arg2: i32) -> (i32, i32, i32) {
    %c0_i32 = arith.constant 0 : i32
    %c0_i32_0 = arith.constant 0 : i32
    return %arg0, %arg1, %c0_i32 : i32, i32, i32
  }
  func.func @transform_2(%arg0: i32, %arg1: i32, %arg2: i32) -> (i32, i32, i32) {
    %c0_i32 = arith.constant 0 : i32
    %c0_i32_0 = arith.constant 0 : i32
    return %arg0, %arg2, %c0_i32 : i32, i32, i32
  }
  func.func @transform_3(%arg0: i32, %arg1: i32, %arg2: i32) -> (i32, i32, i32) {
    %c0_i32 = arith.constant 0 : i32
    %c0_i32_0 = arith.constant 0 : i32
    return %arg0, %arg2, %c0_i32 : i32, i32, i32
  }
  func.func @transform_4(%arg0: i32, %arg1: i32, %arg2: i32) -> (i32, i32, i32) {
    %c0_i32 = arith.constant 0 : i32
    %c0_i32_0 = arith.constant 0 : i32
    return %arg0, %arg2, %c0_i32 : i32, i32, i32
  }
  func.func @transform_5(%arg0: i32, %arg1: i32, %arg2: i32) -> (i32, i32, i32) {
    %c0_i32 = arith.constant 0 : i32
    %c0_i32_0 = arith.constant 0 : i32
    return %arg0, %arg2, %c0_i32 : i32, i32, i32
  }
  func.func @transform_6(%arg0: i32, %arg1: i32, %arg2: i32) -> (i32, i32, i32) {
    %c0_i32 = arith.constant 0 : i32
    %c0_i32_0 = arith.constant 0 : i32
    return %arg0, %arg1, %c0_i32 : i32, i32, i32
  }
  func.func @transform_7(%arg0: i32, %arg1: i32, %arg2: i32) -> (i32, i32, i32) {
    %c0_i32 = arith.constant 0 : i32
    %c0_i32_0 = arith.constant 0 : i32
    return %arg0, %arg1, %c0_i32 : i32, i32, i32
  }
  func.func @transform_8(%arg0: i32, %arg1: i32, %arg2: i32) -> (i32, i32) {
    %c0_i32 = arith.constant 0 : i32
    %c0_i32_0 = arith.constant 0 : i32
    %c0_i32_1 = arith.constant 0 : i32
    return %c0_i32, %c0_i32_0 : i32, i32
  }
  func.func @transform_9(%arg0: i32, %arg1: i32, %arg2: i32) -> (i32, i32) {
    %c0_i32 = arith.constant 0 : i32
    %c0_i32_0 = arith.constant 0 : i32
    %c0_i32_1 = arith.constant 0 : i32
    return %c0_i32, %c0_i32_0 : i32, i32
  }
  func.func @transform_10(%arg0: i32, %arg1: i32, %arg2: i32) -> (i32, i32) {
    %c0_i32 = arith.constant 0 : i32
    %c0_i32_0 = arith.constant 0 : i32
    %c0_i32_1 = arith.constant 0 : i32
    return %c0_i32, %c0_i32_0 : i32, i32
  }
  func.func @transform_11(%arg0: i32, %arg1: i32, %arg2: i32) -> i32 {
    %c0_i32 = arith.constant 0 : i32
    %c0_i32_0 = arith.constant 0 : i32
    return %c0_i32 : i32
  }
  func.func @transform_12(%arg0: i32, %arg1: i32, %arg2: i32) -> (i32, i32, i32) {
    %c0_i32 = arith.constant 0 : i32
    %c0_i32_0 = arith.constant 0 : i32
    return %arg0, %arg1, %c0_i32 : i32, i32, i32
  }
}

</mosaic_0001>

<bundles_post_ra>
// kernel: cafm_pallas.1
= control target key start
LH: loop header
LB: loop body
LE: loop exit
PB: predicated region body
PF: predicated region fallthrough
CT: control target
= control target key end

     0   :  { %17 = vsyncpa [#allocation7], 0  ;;  %s3829_s21 = smov 0   ;;  %s3831_s22 = smov 0   ;;  %s4877_s0 = inlined_call_operand.vmem [shape: bf16[2,128,128], index: 0, kind: input, shape index: {}]   ;;  %s4878_s1 = inlined_call_operand.vmem [shape: bf16[2,128,128], index: 1, kind: input, shape index: {}]   ;;  %s4879_s2 = inlined_call_operand.vmem [shape: bf16[2,128,128], index: 2, kind: input, shape index: {}]   ;;  %s4880_s3 = inlined_call_operand.vmem [shape: bf16[2,128,128], index: 3, kind: input, shape index: {}]   ;;  %s4881_s4 = inlined_call_operand.vmem [shape: bf16[2,128,128], index: 4, kind: input, shape index: {}]   ;;  %s4882_s5 = inlined_call_operand.vmem [shape: bf16[2,128,128], index: 5, kind: input, shape index: {}]   ;;  %s4883_s6 = inlined_call_operand.vmem [shape: f32[2,128,128], index: 6, kind: input, shape index: {}]   ;;  %s4884_s7 = inlined_call_operand.vmem [shape: f32[2,128,128], index: 7, kind: input, shape index: {}]   ;;  %s4885_s8 = inlined_call_operand.vmem [shape: bf16[128,128], index: 8, kind: input, shape index: {}]   ;;  %s4886_s9 = inlined_call_operand.vmem [shape: bf16[128,128], index: 9, kind: input, shape index: {}]   ;;  %s4887_s10 = inlined_call_operand.vmem [shape: f32[1,128], index: 10, kind: input, shape index: {}]   ;;  %s4888_s11 = inlined_call_operand.vmem [shape: f32[2], index: 11, kind: input, shape index: {}]   ;;  %s4889_s12 = inlined_call_operand.vmem [shape: f32[2,128,128], index: 12, kind: output, shape index: {}]  }
   0x1   :  { %s3833_s23 = smov 0  }
   0x2 LB: > { %s3097_s24 = sadd.s32 4294967295, %s3758_s23   ;;  %s42_s25 = sadd.s32 1, %s3754_s22  ;;  %s3758_s23 = sphi %s3833_s23, %s23_s23   ;;  %s3754_s22 = sphi %s3831_s22, %s5009_s22   ;;  %s3750_s21 = sphi %s3829_s21, %s5008_s21  }
   0x3   : > { %p44_p0 = scmp.ge.s32.totalorder %s42_s25, 2  ;;  %p3099_p1 = scmp.ge.s32.totalorder %s3758_s23, 1 }
   0x4   : > { %p383_p2 = scmp.lt.s32.totalorder %s3758_s23, 3  ;;  %p3478_p4 = scmp.eq.s32.totalorder %s3097_s24, 0 }
   0x5   : > { %s5011_s25 = smov (%p44_p0, %s42_s25), 0  ;;  %s404_s28 = sshll.u32 %s4888_s11, 4  ;;  %s405_s28 = int_to_ptr.vmem [resolvable:$true] %s404_s28 }
   0x6   : > { %p384_p3 = pnand %p3099_p1, %p383_p2  ;;  %s3760_s29 = smov [#allocation6]  }
   0x8   : > { %p3474_p5 = pneg %p384_p3  ;;  %521 = sbr.rel (%p384_p3) target bundleno = 1142 (0x476), region = 68 }
   0xa   : > { %p3475_p6 = pnand %p3478_p4, %p3474_p5 }
   0xc   : > { %3477 = dma.vmem_to_smem (!%p3475_p6), %s405_s28, 16, %s3760_s29, [#allocation7]  }
   0xd   : > { %3745 = dma.done.wait (%p3478_p4), [#allocation7], 16  }
   0xe   : > { %3747 = vsyncadd (%p3478_p4), [#allocation7], 4294967280 }
   0xf   : > { %528 = sfence }
  0x10   : > { %p637_p7 = scmp.lt.s32.totalorder %s3750_s21, 1  ;;  %v796_v31 = vlaneseq  ;;  %vm730_vm1 = vcmask 7168   ;;  %s2235_s19 = sld [smem:[#allocation6]] }
  0x11   : > { %s3314_s13 = sld [smem:[#allocation6 + $0x1]] }
  0x12   : > { %s5013_s21 = smov (!%p637_p7, %s3750_s21), 1  ;;  %v3881_v32 = vand.u32 127, %v796_v31 }
  0x13   : > { %s3854_s30 = sshll.u32 %s5013_s21, 6  ;;  %s4624_s20 = sshll.u32 %s5013_s21, 7 }
  0x14   : > { %s664_s15 = scalar_lea.vmem %s4879_s2, %s3854_s30  ;;  %s684_s18 = scalar_lea.vmem %s4881_s4, %s3854_s30  ;;  %vm800_vm0 = vcmp.ge.s32.totalorder %v3881_v32, 64 }
  0x15   : > { %v3405_v0 = vld [vmem:[%s664_s15 + $0x38] sm:$0xff]  ;;  %v3404_v2 = vld [vmem:[%s664_s15 + $0x30] sm:$0xff]  ;;  %v3403_v4 = vld [vmem:[%s664_s15 + $0x28] sm:$0xff]  ;;  %s644_s24 = scalar_lea.vmem %s4877_s0, %s3854_s30  ;;  %s3872_s28 = scalar_lea.vmem %s4878_s1, %s3854_s30 }
  0x16   : > { %v3429_v1 = vld [vmem:[%s684_s18 + $0x38] sm:$0xff]  ;;  %929 = vmatpush.bf16.xpose.msra.mxu0 %v3405_v0  ;;  %v3428_v3 = vld [vmem:[%s684_s18 + $0x30] sm:$0xff]  ;;  %v3427_v5 = vld [vmem:[%s684_s18 + $0x28] sm:$0xff]  ;;  %s4194_s14 = scalar_lea.vmem %s4880_s3, %s3854_s30  ;;  %s4226_s17 = scalar_lea.vmem %s4882_s5, %s3854_s30 }
  0x17   : > { %1646 = vmatpush.bf16.xpose.msra.mxu2 %v3429_v1  ;;  %v3402_v6 = vld [vmem:[%s664_s15 + $0x20] sm:$0xff]  ;;  %v3401_v8 = vld [vmem:[%s664_s15 + $0x18] sm:$0xff]  ;;  %v3400_v10 = vld [vmem:[%s664_s15 + $0x10] sm:$0xff]  ;;  %s4639_s21 = scalar_lea.vmem %s4883_s6, %s4624_s20  ;;  %s4728_s16 = scalar_lea.vmem %s4884_s7, %s4624_s20 }
  0x18   : > { %v3426_v7 = vld [vmem:[%s684_s18 + $0x20] sm:$0xff]  ;;  %v3425_v9 = vld [vmem:[%s684_s18 + $0x18] sm:$0xff]  ;;  %v3424_v11 = vld [vmem:[%s684_s18 + $0x10] sm:$0xff] }
  0x19   : > { %v3399_v12 = vld [vmem:[%s664_s15 + $0x8] sm:$0xff]  ;;  %v3398_v14 = vld [vmem:[%s664_s15] sm:$0xff]  ;;  %v3392_v20 = vld [vmem:[%s644_s24 + $0x10] sm:$0xff] }
  0x1a   : > { %v3423_v13 = vld [vmem:[%s684_s18 + $0x8] sm:$0xff]  ;;  %v3422_v15 = vld [vmem:[%s684_s18] sm:$0xff]  ;;  %v3416_v21 = vld [vmem:[%s3872_s28 + $0x10] sm:$0xff] }
  0x1b   : > { %v3390_v16 = vld [vmem:[%s644_s24] sm:$0xff]  ;;  %v3391_v18 = vld [vmem:[%s644_s24 + $0x8] sm:$0xff]  ;;  %v3393_v22 = vld [vmem:[%s644_s24 + $0x18] sm:$0xff] }
  0x1c   : > { %v3414_v17 = vld [vmem:[%s3872_s28] sm:$0xff]  ;;  %v3415_v19 = vld [vmem:[%s3872_s28 + $0x8] sm:$0xff]  ;;  %v3417_v23 = vld [vmem:[%s3872_s28 + $0x18] sm:$0xff] }
  0x1d   : > { %v3394_v24 = vld [vmem:[%s644_s24 + $0x20] sm:$0xff]  ;;  %v3395_v26 = vld [vmem:[%s644_s24 + $0x28] sm:$0xff]  ;;  %v3396_v28 = vld [vmem:[%s644_s24 + $0x30] sm:$0xff] }
  0x1e   : > { %930 = vmatpush.bf16.xpose.msra.mxu0 %v3404_v2  ;;  %v3418_v25 = vld [vmem:[%s3872_s28 + $0x20] sm:$0xff]  ;;  %v3419_v27 = vld [vmem:[%s3872_s28 + $0x28] sm:$0xff]  ;;  %v3420_v29 = vld [vmem:[%s3872_s28 + $0x30] sm:$0xff] }
  0x1f   : > { %1647 = vmatpush.bf16.xpose.msra.mxu2 %v3428_v3  ;;  %v3397_v30 = vld [vmem:[%s644_s24 + $0x38] sm:$0xff]  ;;  %s4822_s24 = scalar_lea.vmem %s4889_s12, %s4624_s20 }
  0x20   : > { %v3421_v3 = vld [vmem:[%s3872_s28 + $0x38] sm:$0xff] }
  0x26   : > { %931 = vmatpush.bf16.xpose.msra.mxu0 %v3403_v4 }
  0x27   : > { %1648 = vmatpush.bf16.xpose.msra.mxu2 %v3427_v5 }
  0x2e   : > { %932 = vmatpush.bf16.xpose.msra.mxu0 %v3402_v6 }
  0x2f   : > { %1649 = vmatpush.bf16.xpose.msra.mxu2 %v3426_v7 }
  0x36   : > { %933 = vmatpush.bf16.xpose.msra.mxu0 %v3401_v8 }
  0x37   : > { %1650 = vmatpush.bf16.xpose.msra.mxu2 %v3425_v9  ;;  %v3761_v9 = vmov -inf  }
  0x38   : > { %731 = vst.msk [vmem:[#allocation2] sm:$0xff] %vm730_vm1, %v3761_v9 }
  0x39   : > { %732 = vst.msk [vmem:[#allocation2 + $0x8] sm:$0xff] %vm730_vm1, %v3761_v9 }
  0x3a   : > { %733 = vst.msk [vmem:[#allocation2 + $0x10] sm:$0xff] %vm730_vm1, %v3761_v9 }
  0x3b   : > { %734 = vst.msk [vmem:[#allocation2 + $0x18] sm:$0xff] %vm730_vm1, %v3761_v9 }
  0x3c   : > { %735 = vst.msk [vmem:[#allocation2 + $0x20] sm:$0xff] %vm730_vm1, %v3761_v9 }
  0x3d   : > { %736 = vst.msk [vmem:[#allocation2 + $0x28] sm:$0xff] %vm730_vm1, %v3761_v9 }
  0x3e   : > { %934 = vmatpush.bf16.xpose.msra.mxu0 %v3400_v10  ;;  %737 = vst.msk [vmem:[#allocation2 + $0x30] sm:$0xff] %vm730_vm1, %v3761_v9 }
  0x3f   : > { %1651 = vmatpush.bf16.xpose.msra.mxu2 %v3424_v11  ;;  %738 = vst.msk [vmem:[#allocation2 + $0x38] sm:$0xff] %vm730_vm1, %v3761_v9 }
  0x40   : > { %739 = vst.msk [vmem:[#allocation2 + $0x40] sm:$0xff] %vm730_vm1, %v3761_v9 }
  0x41   : > { %740 = vst.msk [vmem:[#allocation2 + $0x48] sm:$0xff] %vm730_vm1, %v3761_v9 }
  0x42   : > { %741 = vst.msk [vmem:[#allocation2 + $0x50] sm:$0xff] %vm730_vm1, %v3761_v9 }
  0x43   : > { %742 = vst.msk [vmem:[#allocation2 + $0x58] sm:$0xff] %vm730_vm1, %v3761_v9 }
  0x44   : > { %743 = vst.msk [vmem:[#allocation2 + $0x60] sm:$0xff] %vm730_vm1, %v3761_v9 }
  0x45   : > { %744 = vst.msk [vmem:[#allocation2 + $0x68] sm:$0xff] %vm730_vm1, %v3761_v9 }
  0x46   : > { %935 = vmatpush.bf16.xpose.msra.mxu0 %v3399_v12  ;;  %745 = vst.msk [vmem:[#allocation2 + $0x70] sm:$0xff] %vm730_vm1, %v3761_v9 }
  0x47   : > { %1652 = vmatpush.bf16.xpose.msra.mxu2 %v3423_v13  ;;  %746 = vst.msk [vmem:[#allocation2 + $0x78] sm:$0xff] %vm730_vm1, %v3761_v9 }
  0x48   : > { %747 = vst.msk [vmem:[#allocation4] sm:$0xff] %vm730_vm1, %v3761_v9 }
  0x49   : > { %748 = vst.msk [vmem:[#allocation4 + $0x8] sm:$0xff] %vm730_vm1, %v3761_v9 }
  0x4a   : > { %749 = vst.msk [vmem:[#allocation4 + $0x10] sm:$0xff] %vm730_vm1, %v3761_v9 }
  0x4b   : > { %750 = vst.msk [vmem:[#allocation4 + $0x18] sm:$0xff] %vm730_vm1, %v3761_v9 }
  0x4c   : > { %751 = vst.msk [vmem:[#allocation4 + $0x20] sm:$0xff] %vm730_vm1, %v3761_v9 }
  0x4d   : > { %752 = vst.msk [vmem:[#allocation4 + $0x28] sm:$0xff] %vm730_vm1, %v3761_v9 }
  0x4e   : > { %936 = vmatpush.bf16.xpose.msra.mxu0 %v3398_v14  ;;  %753 = vst.msk [vmem:[#allocation4 + $0x30] sm:$0xff] %vm730_vm1, %v3761_v9 }
  0x4f   : > { %1653 = vmatpush.bf16.xpose.msra.mxu2 %v3422_v15  ;;  %754 = vst.msk [vmem:[#allocation4 + $0x38] sm:$0xff] %vm730_vm1, %v3761_v9 }
  0x50   : > { %755 = vst.msk [vmem:[#allocation4 + $0x40] sm:$0xff] %vm730_vm1, %v3761_v9 }
  0x51   : > { %756 = vst.msk [vmem:[#allocation4 + $0x48] sm:$0xff] %vm730_vm1, %v3761_v9 }
  0x52   : > { %757 = vst.msk [vmem:[#allocation4 + $0x50] sm:$0xff] %vm730_vm1, %v3761_v9 }
  0x53   : > { %758 = vst.msk [vmem:[#allocation4 + $0x58] sm:$0xff] %vm730_vm1, %v3761_v9 }
  0x54   : > { %759 = vst.msk [vmem:[#allocation4 + $0x60] sm:$0xff] %vm730_vm1, %v3761_v9 }
  0x55   : > { %937 = vmatmul.bf16.vlgmr.msra.gmra.mxu0 %v3390_v16  ;;  %760 = vst.msk [vmem:[#allocation4 + $0x68] sm:$0xff] %vm730_vm1, %v3761_v9 }
  0x56   : > { %1654 = vmatmul.bf16.vlgmr.msra.gmra.mxu2 %v3414_v17  ;;  %761 = vst.msk [vmem:[#allocation4 + $0x70] sm:$0xff] %vm730_vm1, %v3761_v9 }
  0x57   : > { %762 = vst.msk [vmem:[#allocation4 + $0x78] sm:$0xff] %vm730_vm1, %v3761_v9 }
  0x65   : > { %942 = vmatmul.bf16.gmra.mxu0 %v3391_v18 }
  0x66   : > { %1659 = vmatmul.bf16.gmra.mxu2 %v3415_v19 }
  0x75   : > { %947 = vmatmul.bf16.gmra.mxu0 %v3392_v20 }
  0x76   : > { %1664 = vmatmul.bf16.gmra.mxu2 %v3416_v21  ;;  %v4890_v21 = vmov 0  }
  0x77   : > { %3508 = vset.pattern.permute.xlu1 %v4890_v21  ;;  %3510 = vset.pattern.permute.xlu0 %v4890_v21 }
  0x78   : > { %3509 = vset.pattern.permute.xlu2 %v4890_v21  ;;  %v4164_v21 = vld [vmem:[#allocation2 + $0x38] sm:$0xff] }
  0x79   : > { %4936 = vst [vmem:[#allocation22_spill] sm:$0xff] %v4164_v21 }
  0x85   : > { %952 = vmatmul.bf16.gmra.mxu0 %v3393_v22 }
  0x86   : > { %1669 = vmatmul.bf16.gmra.mxu2 %v3417_v23 }
  0x95   : > { %957 = vmatmul.bf16.gmra.mxu0 %v3394_v24 }
  0x96   : > { %1674 = vmatmul.bf16.gmra.mxu2 %v3418_v25 }
  0xa5   : > { %962 = vmatmul.bf16.gmra.mxu0 %v3395_v26 }
  0xa6   : > { %1679 = vmatmul.bf16.gmra.mxu2 %v3419_v27  ;;  %v996_v27 = vld [vmem:[#allocation2] sm:$0xff] }
  0xb5   : > { %967 = vmatmul.bf16.gmra.mxu0 %v3396_v28 }
  0xb6   : > { %1684 = vmatmul.bf16.gmra.mxu2 %v3420_v29 }
  0xc5   : > { %972 = vmatmul.bf16.gmra.mxu0 %v3397_v30 }
  0xc6   : > { %1689 = vmatmul.bf16.gmra.mxu2 %v3421_v3 }
  0xd2   : > { %v938_v33 = vpop.f32.mrf.mxu0 }
  0xd3   : > { %v3886_v34 = vsel %vm800_vm0, -inf, %v938_v33 }
  0xd4   : > { %1012 = vmax.xlane.f32.xlu0 %v3886_v34 }
  0xd9   : > { %v1655_v35 = vpop.f32.mrf.mxu2 }
  0xda   : > { %v3891_v36 = vsel %vm800_vm0, -inf, %v1655_v35  ;;  %v940_v37 = vpop.f32.mrf.mxu0 }
  0xdb   : > { %v3901_v41 = vsel %vm800_vm0, -inf, %v940_v37  ;;  %v4068_v37 = vld [vmem:[#allocation4] sm:$0xff] }
  0xdc   : > { %1727 = vmax.xlane.f32.xlu0 %v3891_v36 }
  0xe1   : > { %v1657_v38 = vpop.f32.mrf.mxu2 }
  0xe2   : > { %v3896_v39 = vsel %vm800_vm0, -inf, %v1657_v38  ;;  %v943_v40 = vpop.f32.mrf.mxu0 }
  0xe3   : > { %1729 = vmax.xlane.f32.xlu2 %v3896_v39  ;;  %v3905_v42 = vsel %vm800_vm0, -inf, %v943_v40 }
  0xe4   : > { %1014 = vmax.xlane.f32.xlu0 %v3901_v41  ;;  %1016 = vmax.xlane.f32.xlu1 %v3905_v42 }
  0xe9   : > { %v1660_v43 = vpop.f32.mrf.mxu2 }
  0xea   : > { %v3911_v44 = vsel %vm800_vm0, -inf, %v1660_v43  ;;  %v945_v45 = vpop.f32.mrf.mxu0 }
  0xeb   : > { %v3921_v49 = vsel %vm800_vm0, -inf, %v945_v45  ;;  %v4077_v45 = vld [vmem:[#allocation4 + $0x8] sm:$0xff] }
  0xec   : > { %1731 = vmax.xlane.f32.xlu1 %v3911_v44 }
  0xf1   : > { %v1662_v46 = vpop.f32.mrf.mxu2 }
  0xf2   : > { %v3916_v47 = vsel %vm800_vm0, -inf, %v1662_v46  ;;  %v948_v48 = vpop.f32.mrf.mxu0 }
  0xf3   : > { %1733 = vmax.xlane.f32.xlu2 %v3916_v47  ;;  %v3926_v51 = vsel %vm800_vm0, -inf, %v948_v48  ;;  %v4079_v48 = vld [vmem:[#allocation2 + $0x8] sm:$0xff] }
  0xf4   : > { %1018 = vmax.xlane.f32.xlu1 %v3921_v49 }
  0xf9   : > { %v1665_v50 = vpop.f32.mrf.mxu2 }
  0xfa   : > { %v3930_v52 = vsel %vm800_vm0, -inf, %v1665_v50  ;;  %v950_v53 = vpop.f32.mrf.mxu0  ;;  %v998_v50 = vld [vmem:[#allocation2 + $0x10] sm:$0xff] }
  0xfb   : > { %1020 = vmax.xlane.f32.xlu2 %v3926_v51  ;;  %v3936_v55 = vsel %vm800_vm0, -inf, %v950_v53 }
  0xfc   : > { %1735 = vmax.xlane.f32.xlu1 %v3930_v52 }
 0x101   : > { %v1667_v54 = vpop.f32.mrf.mxu2 }
 0x102   : > { %v953_v56 = vpop.f32.mrf.mxu0  ;;  %v3946_v59 = vsel %vm800_vm0, -inf, %v1667_v54 }
 0x103   : > { %1022 = vmax.xlane.f32.xlu2 %v3936_v55  ;;  %v3941_v57 = vsel %vm800_vm0, -inf, %v953_v56 }
 0x104   : > { %1024 = vmax.xlane.f32.xlu0 %v3941_v57 }
 0x109   : > { %v1670_v58 = vpop.f32.mrf.mxu2 }
 0x10a   : > { %v3950_v60 = vsel %vm800_vm0, -inf, %v1670_v58  ;;  %v955_v61 = vpop.f32.mrf.mxu0 }
 0x10b   : > { %1737 = vmax.xlane.f32.xlu2 %v3946_v59  ;;  %v3955_v62 = vsel %vm800_vm0, -inf, %v955_v61 }
 0x10c   : > { %1026 = vmax.xlane.f32.xlu1 %v3955_v62  ;;  %1739 = vmax.xlane.f32.xlu0 %v3950_v60 }
 0x111   : > { %v1672_v63 = vpop.f32.mrf.mxu2 }
 0x112   : > { %v3961_v0 = vsel %vm800_vm0, -inf, %v1672_v63  ;;  %v958_v1 = vpop.f32.mrf.mxu0 }
 0x113   : > { %v3965_v2 = vsel %vm800_vm0, -inf, %v958_v1 }
 0x114   : > { %1741 = vmax.xlane.f32.xlu1 %v3961_v0  ;;  %1028 = vmax.xlane.f32.xlu2 %v3965_v2 }
 0x119   : > { %v1675_v4 = vpop.f32.mrf.mxu2 }
 0x11a   : > { %v3972_v5 = vsel %vm800_vm0, -inf, %v1675_v4  ;;  %v960_v6 = vpop.f32.mrf.mxu0 }
 0x11b   : > { %v3976_v7 = vsel %vm800_vm0, -inf, %v960_v6  ;;  %v4095_v6 = vld [vmem:[#allocation4 + $0x10] sm:$0xff] }
 0x11c   : > { %1743 = vmax.xlane.f32.xlu2 %v3972_v5  ;;  %1030 = vmax.xlane.f32.xlu0 %v3976_v7 }
 0x121   : > { %v1677_v8 = vpop.f32.mrf.mxu2 }
 0x122   : > { %v3983_v10 = vsel %vm800_vm0, -inf, %v1677_v8  ;;  %v963_v11 = vpop.f32.mrf.mxu0 }
 0x123   : > { %v3989_v12 = vsel %vm800_vm0, -inf, %v963_v11 }
 0x124   : > { %4923 = vst [vmem:[#allocation9_spill] sm:$0xff] %v3989_v12  ;;  %1745 = vmax.xlane.f32.xlu0 %v3983_v10  ;;  %1032 = vmax.xlane.f32.xlu1 %v3989_v12 }
 0x129   : > { %v1680_v13 = vpop.f32.mrf.mxu2 }
 0x12a   : > { %v4001_v14 = vsel %vm800_vm0, -inf, %v1680_v13  ;;  %v965_v15 = vpop.f32.mrf.mxu0 }
 0x12b   : > { %4924 = vst [vmem:[#allocation10_spill] sm:$0xff] %v4001_v14  ;;  %v4007_v16 = vsel %vm800_vm0, -inf, %v965_v15  ;;  %v4104_v15 = vld [vmem:[#allocation4 + $0x18] sm:$0xff] }
 0x12c   : > { %4925 = vst [vmem:[#allocation11_spill] sm:$0xff] %v4007_v16  ;;  %1747 = vmax.xlane.f32.xlu0 %v4001_v14  ;;  %1034 = vmax.xlane.f32.xlu2 %v4007_v16 }
 0x12d   : > { %4932 = vst [vmem:[#allocation18_spill] sm:$0xff] %v4104_v15 }
 0x131   : > { %v1682_v17 = vpop.f32.mrf.mxu2 }
 0x132   : > { %v4019_v18 = vsel %vm800_vm0, -inf, %v1682_v17  ;;  %v968_v19 = vpop.f32.mrf.mxu0 }
 0x133   : > { %4926 = vst [vmem:[#allocation12_spill] sm:$0xff] %v4019_v18  ;;  %v4025_v20 = vsel %vm800_vm0, -inf, %v968_v19  ;;  %v4107_v19 = vld [vmem:[#allocation2 + $0x18] sm:$0xff] }
 0x134   : > { %4927 = vst [vmem:[#allocation13_spill] sm:$0xff] %v4025_v20  ;;  %1749 = vmax.xlane.f32.xlu2 %v4019_v18  ;;  %1036 = vmax.xlane.f32.xlu0 %v4025_v20 }
 0x139   : > { %v4048_v24 = vpop.f32.mrf.mxu2 }
 0x13a   : > { %v970_v22 = vpop.f32.mrf.mxu0 }
 0x13b   : > { %v4042_v23 = vsel %vm800_vm0, -inf, %v970_v22 }
 0x13c   : > { %4928 = vst [vmem:[#allocation14_spill] sm:$0xff] %v4042_v23  ;;  %1038 = vmax.xlane.f32.xlu1 %v4042_v23 }
 0x141   : > { %v1687_v29 = vpop.f32.mrf.mxu2 }
 0x142   : > { %v973_v25 = vpop.f32.mrf.mxu0  ;;  %v4060_v33 = vsel %vm800_vm0, -inf, %v1687_v29 }
 0x143   : > { %v4054_v26 = vsel %vm800_vm0, -inf, %v973_v25  ;;  %4930 = vst [vmem:[#allocation16_spill] sm:$0xff] %v4060_v33 }
 0x144   : > { %4929 = vst [vmem:[#allocation15_spill] sm:$0xff] %v4054_v26  ;;  %1040 = vmax.xlane.f32.xlu2 %v4054_v26 }
 0x147   : > { %v1013_v28 = vpop.xlane.xlu0 %1012 }
 0x148   : > { %v1044_v30 = vmax.f32 %v996_v27, %v1013_v28 }
 0x14a   : > { %1502 = vst.msk [vmem:[#allocation2] sm:$0xff] %vm730_vm1, %v1044_v30  ;;  %v975_v31 = vpop.f32.mrf.mxu0  ;;  %v1060_v3 = vsub.f32 %v996_v27, %v1044_v30 }
 0x14b   : > { %v4064_v35 = vsel %vm800_vm0, -inf, %v975_v31 }
 0x14c   : > { %4931 = vst [vmem:[#allocation17_spill] sm:$0xff] %v4064_v35  ;;  %1753 = vmax.xlane.f32.xlu2 %v4060_v33  ;;  %1042 = vmax.xlane.f32.xlu0 %v4064_v35  ;;  %v1076_v11 = vmul.f32 1.442695, %v1060_v3  ;;  %v4166_v3 = vld [vmem:[#allocation4 + $0x30] sm:$0xff]  ;;  %v3437_v33 = vld [vmem:[%s4226_s17 + $0x38] sm:$0xff] }
 0x14d   : > { %4937 = vst [vmem:[#allocation23_spill] sm:$0xff] %v4166_v3  ;;  %2135 = vmatpush.bf16.msrb.mxu2 %v3437_v33  ;;  %3462 = vmatpush.bf16.msra.mxu3 %v3437_v33  ;;  %v4253_v33 = vld [vmem:[#allocation2 + $0x50] sm:$0xff] }
 0x14e   : > { %4945 = vst [vmem:[#allocation31_spill] sm:$0xff] %v4253_v33 }
 0x14f   : > { %v1728_v38 = vpop.xlane.xlu0 %1727 }
 0x150   : > { %v4071_v40 = vmax.f32 %v4068_v37, %v1728_v38  ;;  %v4123_v38 = vld [vmem:[#allocation2 + $0x20] sm:$0xff] }
 0x152   : > { %2216 = vst.msk [vmem:[#allocation4] sm:$0xff] %vm730_vm1, %v4071_v40 }
 0x155   : > { %1110 = vperm.xlu1 %3508, %v1044_v30   ;;  %v3413_v30 = vld [vmem:[%s4194_s14 + $0x38] sm:$0xff] }
 0x156   : > { %v1730_v46 = vpop.xlane.xlu2 %1729  ;;  %1420 = vmatpush.bf16.msrb.mxu0 %v3413_v30  ;;  %3454 = vmatpush.bf16.msra.mxu1 %v3413_v30  ;;  %v4228_v30 = vld [vmem:[#allocation4 + $0x40] sm:$0xff] }
 0x157   : > { %v4082_v53 = vmax.f32 %v4077_v45, %v1730_v46  ;;  %v1015_v54 = vpop.xlane.xlu0 %1014  ;;  %v1017_v56 = vpop.xlane.xlu1 %1016 }
 0x158   : > { %v4089_v61 = vmax.f32 %v4079_v48, %v1015_v54  ;;  %v1046_v63 = vmax.f32 %v998_v50, %v1017_v56 }
 0x159   : > { %2217 = vst.msk [vmem:[#allocation4 + $0x8] sm:$0xff] %vm730_vm1, %v4082_v53 }
 0x15a   : > { %1503 = vst.msk [vmem:[#allocation2 + $0x8] sm:$0xff] %vm730_vm1, %v4089_v61  ;;  %v1062_v1 = vsub.f32 %v998_v50, %v1046_v63  ;;  %v4125_v50 = vld [vmem:[#allocation4 + $0x20] sm:$0xff] }
 0x15b   : > { %1504 = vst.msk [vmem:[#allocation2 + $0x10] sm:$0xff] %vm730_vm1, %v1046_v63 }
 0x15c   : > { %v1080_v4 = vmul.f32 1.442695, %v1062_v1  ;;  %4934 = vst [vmem:[#allocation20_spill] sm:$0xff] %v4125_v50 }
 0x15d   : > { %1825 = vperm.xlu1 %3508, %v4071_v40  }
 0x15e   : > { %3525 = vpow2.f32 %v1080_v4  ;;  %v4142_v4 = vld [vmem:[#allocation2 + $0x28] sm:$0xff] }
 0x15f   : > { %v1732_v8 = vpop.xlane.xlu1 %1731  ;;  %3527 = vpow2.f32 %v1076_v11  ;;  %v4145_v11 = vld [vmem:[#allocation2 + $0x30] sm:$0xff] }
 0x160   : > { %v4098_v9 = vmax.f32 %v4095_v6, %v1732_v8  ;;  %1120 = vperm.xlu0 %3510, %v1046_v63  }
 0x162   : > { %2218 = vst.msk [vmem:[#allocation4 + $0x10] sm:$0xff] %vm730_vm1, %v4098_v9 }
 0x164   : > { %1115 = vperm.xlu2 %3509, %v4089_v61   ;;  %v3526_v25 = vpop.eup %3525 }
 0x165   : > { %v3528_v31 = vpop.eup %3527 }
 0x166   : > { %v1734_v17 = vpop.xlane.xlu2 %1733 }
 0x167   : > { %v4110_v22 = vmax.f32 %v4104_v15, %v1734_v17  ;;  %v1019_v27 = vpop.xlane.xlu1 %1018 }
 0x168   : > { %v4117_v29 = vmax.f32 %v4107_v19, %v1019_v27  ;;  %1264 = vperm.xlu0 %3510, %v3526_v25  }
 0x169   : > { %4933 = vst [vmem:[#allocation19_spill] sm:$0xff] %v4110_v22 }
 0x16a   : > { %2219 = vst.msk [vmem:[#allocation4 + $0x18] sm:$0xff] %vm730_vm1, %v4110_v22 }
 0x16b   : > { %1505 = vst.msk [vmem:[#allocation2 + $0x18] sm:$0xff] %vm730_vm1, %v4117_v29 }
 0x16c   : > { %1254 = vperm.xlu2 %3509, %v3528_v31  }
 0x16e   : > { %v1021_v46 = vpop.xlane.xlu2 %1020 }
 0x16f   : > { %v4128_v54 = vmax.f32 %v4123_v38, %v1021_v46  ;;  %v1736_v56 = vpop.xlane.xlu1 %1735 }
 0x170   : > { %v4135_v1 = vmax.f32 %v4125_v50, %v1736_v56  ;;  %v4161_v56 = vld [vmem:[#allocation4 + $0x28] sm:$0xff] }
 0x171   : > { %1506 = vst.msk [vmem:[#allocation2 + $0x20] sm:$0xff] %vm730_vm1, %v4128_v54 }
 0x172   : > { %4935 = vst [vmem:[#allocation21_spill] sm:$0xff] %v4135_v1  ;;  %1845 = vperm.xlu0 %3510, %v4135_v1  }
 0x173   : > { %2220 = vst.msk [vmem:[#allocation4 + $0x20] sm:$0xff] %vm730_vm1, %v4135_v1  ;;  %v4325_v1 = vld [vmem:[#allocation2 + $0x70] sm:$0xff] }
 0x174   : > { %1830 = vperm.xlu2 %3509, %v4082_v53   ;;  %4950 = vst [vmem:[#allocation36_spill] sm:$0xff] %v4325_v1 }
 0x176   : > { %v1023_v8 = vpop.xlane.xlu2 %1022 }
 0x177   : > { %v4148_v17 = vmax.f32 %v4142_v4, %v1023_v8  ;;  %v1025_v25 = vpop.xlane.xlu0 %1024 }
 0x178   : > { %v4155_v31 = vmax.f32 %v4145_v11, %v1025_v25 }
 0x179   : > { %1507 = vst.msk [vmem:[#allocation2 + $0x28] sm:$0xff] %vm730_vm1, %v4148_v17 }
 0x17a   : > { %1508 = vst.msk [vmem:[#allocation2 + $0x30] sm:$0xff] %vm730_vm1, %v4155_v31 }
 0x17c   : > { %1835 = vperm.xlu2 %3509, %v4098_v9  }
 0x17e   : > { %v1738_v8 = vpop.xlane.xlu2 %1737 }
 0x17f   : > { %v4169_v28 = vmax.f32 %v4161_v56, %v1738_v8  ;;  %v1027_v25 = vpop.xlane.xlu1 %1026  ;;  %v1740_v58 = vpop.xlane.xlu0 %1739  ;;  %v4203_v8 = vsel %vm800_vm0, -inf, %v4048_v24 }
 0x180   : > { %v4176_v27 = vmax.f32 %v4164_v21, %v1027_v25  ;;  %v4179_v13 = vmax.f32 %v4166_v3, %v1740_v58  ;;  %v4196_v58 = vld [vmem:[#allocation4 + $0x38] sm:$0xff]  ;;  %v4198_v25 = vld [vmem:[#allocation2 + $0x40] sm:$0xff]  ;;  %4941 = vst [vmem:[#allocation27_spill] sm:$0xff] %v4203_v8  ;;  %v1061_v3 = vsub.f32 %v4079_v48, %v4089_v61  ;;  %v4251_v48 = vld [vmem:[#allocation4 + $0x48] sm:$0xff] }
 0x181   : > { %2221 = vst.msk [vmem:[#allocation4 + $0x28] sm:$0xff] %vm730_vm1, %v4169_v28  ;;  %v3412_v61 = vld [vmem:[%s4194_s14 + $0x30] sm:$0xff] }
 0x182   : > { %4938 = vst [vmem:[#allocation24_spill] sm:$0xff] %v4176_v27  ;;  %1421 = vmatpush.bf16.msrb.mxu0 %v3412_v61  ;;  %3455 = vmatpush.bf16.msra.mxu1 %v3412_v61  ;;  %v3411_v61 = vld [vmem:[%s4194_s14 + $0x28] sm:$0xff] }
 0x183   : > { %4939 = vst [vmem:[#allocation25_spill] sm:$0xff] %v4179_v13 }
 0x184   : > { %1509 = vst.msk [vmem:[#allocation2 + $0x38] sm:$0xff] %vm730_vm1, %v4176_v27  ;;  %1125 = vperm.xlu2 %3509, %v4117_v29  }
 0x185   : > { %2222 = vst.msk [vmem:[#allocation4 + $0x30] sm:$0xff] %vm730_vm1, %v4179_v13 }
 0x186   : > { %4940 = vst [vmem:[#allocation26_spill] sm:$0xff] %v4198_v25  ;;  %1422 = vmatpush.bf16.msrb.mxu0 %v3411_v61  ;;  %3456 = vmatpush.bf16.msra.mxu1 %v3411_v61 }
 0x187   : > { %v1742_v63 = vpop.xlane.xlu1 %1741  ;;  %v1029_v46 = vpop.xlane.xlu2 %1028  ;;  %1751 = vmax.xlane.f32.xlu1 %v4203_v8  ;;  %4944 = vst [vmem:[#allocation30_spill] sm:$0xff] %v4251_v48 }
 0x188   : > { %v4208_v43 = vmax.f32 %v4196_v58, %v1742_v63  ;;  %v4211_v26 = vmax.f32 %v4198_v25, %v1029_v46  ;;  %v4230_v63 = vld [vmem:[#allocation2 + $0x48] sm:$0xff] }
 0x189   : > { %4942 = vst [vmem:[#allocation28_spill] sm:$0xff] %v4230_v63 }
 0x18a   : > { %2223 = vst.msk [vmem:[#allocation4 + $0x38] sm:$0xff] %vm730_vm1, %v4208_v43 }
 0x18b   : > { %1510 = vst.msk [vmem:[#allocation2 + $0x40] sm:$0xff] %vm730_vm1, %v4211_v26 }
 0x18c   : > { %1840 = vperm.xlu2 %3509, %v4110_v22  }
 0x18f   : > { %v1744_v46 = vpop.xlane.xlu2 %1743  ;;  %v1031_v35 = vpop.xlane.xlu0 %1030 }
 0x190   : > { %v4234_v24 = vmax.f32 %v4228_v30, %v1744_v46  ;;  %v4237_v8 = vmax.f32 %v4230_v63, %v1031_v35  ;;  %v1078_v35 = vmul.f32 1.442695, %v1061_v3 }
 0x192   : > { %4943 = vst [vmem:[#allocation29_spill] sm:$0xff] %v4237_v8  ;;  %1865 = vperm.xlu0 %3510, %v4234_v24   ;;  %3529 = vpow2.f32 %v1078_v35  ;;  %v3436_v35 = vld [vmem:[%s4226_s17 + $0x30] sm:$0xff] }
 0x193   : > { %2224 = vst.msk [vmem:[#allocation4 + $0x40] sm:$0xff] %vm730_vm1, %v4234_v24  ;;  %2136 = vmatpush.bf16.msrb.mxu2 %v3436_v35  ;;  %3463 = vmatpush.bf16.msra.mxu3 %v3436_v35 }
 0x194   : > { %1511 = vst.msk [vmem:[#allocation2 + $0x48] sm:$0xff] %vm730_vm1, %v4237_v8  ;;  %1135 = vperm.xlu2 %3509, %v4148_v17  }
 0x197   : > { %v1746_v46 = vpop.xlane.xlu0 %1745  ;;  %v1033_v20 = vpop.xlane.xlu1 %1032 }
 0x198   : > { %v4257_v18 = vmax.f32 %v4251_v48, %v1746_v46  ;;  %v4260_v23 = vmax.f32 %v4253_v33, %v1033_v20  ;;  %v4270_v46 = vld [vmem:[#allocation4 + $0x50] sm:$0xff]  ;;  %v4272_v20 = vld [vmem:[#allocation2 + $0x58] sm:$0xff]  ;;  %v3530_v63 = vpop.eup %3529 }
 0x199   : > { %4946 = vst [vmem:[#allocation32_spill] sm:$0xff] %v4270_v46 }
 0x19a   : > { %2225 = vst.msk [vmem:[#allocation4 + $0x48] sm:$0xff] %vm730_vm1, %v4257_v18  ;;  %1155 = vperm.xlu0 %3510, %v4237_v8  }
 0x19b   : > { %1512 = vst.msk [vmem:[#allocation2 + $0x50] sm:$0xff] %vm730_vm1, %v4260_v23 }
 0x19c   : > { %1145 = vperm.xlu2 %3509, %v4176_v27   ;;  %4947 = vst [vmem:[#allocation33_spill] sm:$0xff] %v4272_v20  ;;  %v3410_v27 = vld [vmem:[%s4194_s14 + $0x20] sm:$0xff] }
 0x19d   : > { %1423 = vmatpush.bf16.msrb.mxu0 %v3410_v27  ;;  %3457 = vmatpush.bf16.msra.mxu1 %v3410_v27  ;;  %v3408_v27 = vld [vmem:[%s4194_s14 + $0x10] sm:$0xff] }
 0x19f   : > { %v1748_v33 = vpop.xlane.xlu0 %1747  ;;  %v1035_v3 = vpop.xlane.xlu2 %1034 }
 0x1a0   : > { %v4277_v8 = vmax.f32 %v4270_v46, %v1748_v33  ;;  %v4280_v48 = vmax.f32 %v4272_v20, %v1035_v3  ;;  %1259 = vperm.xlu1 %3508, %v3530_v63   ;;  %v4292_v63 = vld [vmem:[#allocation4 + $0x58] sm:$0xff]  ;;  %v4294_v33 = vld [vmem:[#allocation2 + $0x60] sm:$0xff] }
 0x1a1   : > { %4948 = vst [vmem:[#allocation34_spill] sm:$0xff] %v4294_v33  ;;  %v3409_v3 = vld [vmem:[%s4194_s14 + $0x18] sm:$0xff]  ;;  %v3406_v20 = vld [vmem:[%s4194_s14] sm:$0xff] }
 0x1a2   : > { %2226 = vst.msk [vmem:[#allocation4 + $0x50] sm:$0xff] %vm730_vm1, %v4277_v8  ;;  %1424 = vmatpush.bf16.msrb.mxu0 %v3409_v3  ;;  %3458 = vmatpush.bf16.msra.mxu1 %v3409_v3  ;;  %v4311_v3 = vld [vmem:[#allocation2 + $0x68] sm:$0xff] }
 0x1a3   : > { %1513 = vst.msk [vmem:[#allocation2 + $0x58] sm:$0xff] %vm730_vm1, %v4280_v48 }
 0x1a4   : > { %1860 = vperm.xlu2 %3509, %v4208_v43   ;;  %4949 = vst [vmem:[#allocation35_spill] sm:$0xff] %v4311_v3 }
 0x1a6   : > { %1425 = vmatpush.bf16.msrb.mxu0 %v3408_v27  ;;  %3459 = vmatpush.bf16.msra.mxu1 %v3408_v27  ;;  %v3431_v27 = vld [vmem:[%s4226_s17 + $0x8] sm:$0xff] }
 0x1a7   : > { %v1750_v35 = vpop.xlane.xlu2 %1749  ;;  %v1037_v21 = vpop.xlane.xlu0 %1036 }
 0x1a8   : > { %v4298_v61 = vmax.f32 %v4292_v63, %v1750_v35  ;;  %v4301_v46 = vmax.f32 %v4294_v33, %v1037_v21  ;;  %1130 = vperm.xlu1 %3508, %v4128_v54   ;;  %v3435_v21 = vld [vmem:[%s4226_s17 + $0x28] sm:$0xff]  ;;  %v3434_v33 = vld [vmem:[%s4226_s17 + $0x20] sm:$0xff] }
 0x1a9   : > { %v3407_v35 = vld [vmem:[%s4194_s14 + $0x8] sm:$0xff]  ;;  %2137 = vmatpush.bf16.msrb.mxu2 %v3435_v21  ;;  %3464 = vmatpush.bf16.msra.mxu3 %v3435_v21 }
 0x1aa   : > { %2227 = vst.msk [vmem:[#allocation4 + $0x58] sm:$0xff] %vm730_vm1, %v4298_v61  ;;  %1426 = vmatpush.bf16.msrb.mxu0 %v3407_v35  ;;  %3460 = vmatpush.bf16.msra.mxu1 %v3407_v35  ;;  %v3432_v35 = vld [vmem:[%s4226_s17 + $0x10] sm:$0xff] }
 0x1ab   : > { %1514 = vst.msk [vmem:[#allocation2 + $0x60] sm:$0xff] %vm730_vm1, %v4301_v46 }
 0x1ad   : > { %2138 = vmatpush.bf16.msrb.mxu2 %v3434_v33  ;;  %3465 = vmatpush.bf16.msra.mxu3 %v3434_v33  ;;  %v4336_v33 = vld [vmem:[#allocation4 + $0x68] sm:$0xff] }
 0x1ae   : > { %1427 = vmatpush.bf16.msrb.mxu0 %v3406_v20  ;;  %3461 = vmatpush.bf16.msra.mxu1 %v3406_v20  ;;  %4951 = vst [vmem:[#allocation37_spill] sm:$0xff] %v4336_v33  ;;  %v1690_v20 = vpop.f32.mrf.mxu2 }
 0x1af   : > { %v1039_v14 = vpop.xlane.xlu1 %1038 }
 0x1b0   : > { %v4316_v16 = vmax.f32 %v4311_v3, %v1039_v14  ;;  %1850 = vperm.xlu1 %3508, %v4169_v28   ;;  %v3433_v14 = vld [vmem:[%s4226_s17 + $0x18] sm:$0xff] }
 0x1b1   : > { %2139 = vmatpush.bf16.msrb.mxu2 %v3433_v14  ;;  %3466 = vmatpush.bf16.msra.mxu3 %v3433_v14  ;;  %v4338_v3 = vld [vmem:[#allocation2 + $0x78] sm:$0xff] }
 0x1b2   : > { %1515 = vst.msk [vmem:[#allocation2 + $0x68] sm:$0xff] %vm730_vm1, %v4316_v16 }
 0x1b3   : > { %4952 = vst [vmem:[#allocation38_spill] sm:$0xff] %v4338_v3 }
 0x1b5   : > { %2140 = vmatpush.bf16.msrb.mxu2 %v3432_v35  ;;  %3467 = vmatpush.bf16.msra.mxu3 %v3432_v35  ;;  %v4349_v35 = vsel %vm800_vm0, -inf, %v1690_v20 }
 0x1b7   : > { %v1041_v50 = vpop.xlane.xlu2 %1040 }
 0x1b8   : > { %v4329_v21 = vmax.f32 %v4325_v1, %v1041_v50  ;;  %1140 = vperm.xlu1 %3508, %v4155_v31   ;;  %v3430_v1 = vld [vmem:[%s4226_s17] sm:$0xff] }
 0x1b9   : > { %2141 = vmatpush.bf16.msrb.mxu2 %v3431_v27  ;;  %3468 = vmatpush.bf16.msra.mxu3 %v3431_v27 }
 0x1ba   : > { %1516 = vst.msk [vmem:[#allocation2 + $0x70] sm:$0xff] %vm730_vm1, %v4329_v21 }
 0x1bd   : > { %2142 = vmatpush.bf16.msrb.mxu2 %v3430_v1  ;;  %3469 = vmatpush.bf16.msra.mxu3 %v3430_v1 }
 0x1bf   : > { %v1754_v25 = vpop.xlane.xlu2 %1753  ;;  %v1043_v12 = vpop.xlane.xlu0 %1042 }
 0x1c0   : > { %v4341_v50 = vmax.f32 %v4336_v33, %v1754_v25  ;;  %v4344_v14 = vmax.f32 %v4338_v3, %v1043_v12  ;;  %1855 = vperm.xlu1 %3508, %v4179_v13   ;;  %v1692_v33 = vpop.f32.mrf.mxu2 }
 0x1c1   : > { %v4364_v22 = vsel %vm800_vm0, -inf, %v1692_v33 }
 0x1c2   : > { %4953 = vst [vmem:[#allocation39_spill] sm:$0xff] %v4344_v14 }
 0x1c3   : > { %2229 = vst.msk [vmem:[#allocation4 + $0x68] sm:$0xff] %vm730_vm1, %v4341_v50 }
 0x1c4   : > { %1517 = vst.msk [vmem:[#allocation2 + $0x78] sm:$0xff] %vm730_vm1, %v4344_v14  ;;  %1755 = vmax.xlane.f32.xlu0 %v4349_v35 }
 0x1c7   : > { %v1111_v12 = vpop.permute.xlu1 %1110  ;;  %v1116_v25 = vpop.permute.xlu2 %1115 }
 0x1c8   : > { %v1188_v27 = vsub.f32 %v3886_v34, %v1111_v12  ;;  %v1189_v20 = vsub.f32 %v3901_v41, %v1116_v25  ;;  %1150 = vperm.xlu1 %3508, %v4211_v26  }
 0x1ca   : > { %v1204_v13 = vmul.f32 1.442695, %v1188_v27  ;;  %v1206_v15 = vmul.f32 1.442695, %v1189_v20 }
 0x1cc   : > { %3531 = vpow2.f32 %v1204_v13 }
 0x1cd   : > { %3533 = vpow2.f32 %v1206_v15  ;;  %1757 = vmax.xlane.f32.xlu2 %v4364_v22 }
 0x1cf   : > { %v4367_v1 = vpop.permute.xlu2 %1254  ;;  %v1826_v3 = vpop.permute.xlu1 %1825 }
 0x1d0   : > { %1870 = vperm.xlu1 %3508, %v4257_v18   ;;  %v1903_v12 = vsub.f32 %v3891_v36, %v1826_v3 }
 0x1d2   : > { %v3532_v34 = vpop.eup %3531  ;;  %v1919_v27 = vmul.f32 1.442695, %v1903_v12  ;;  %v1121_v20 = vpop.permute.xlu0 %1120 }
 0x1d3   : > { %v3534_v41 = vpop.eup %3533 }
 0x1d4   : > { %v1348_v25 = vpack.c.bf16 %v3534_v41, %v3532_v34  ;;  %3535 = vpow2.f32 %v1919_v27  ;;  %v1190_v34 = vsub.f32 %v3905_v42, %v1121_v20 }
 0x1d6   : > { %1428 = vmatmul.bf16.vlgmr.msrb.gmra.mxu0 %v1348_v25 }
 0x1d7   : > { %v1831_v13 = vpop.permute.xlu2 %1830 }
 0x1d8   : > { %v1904_v32 = vsub.f32 %v3896_v39, %v1831_v13  ;;  %1875 = vperm.xlu1 %3508, %v4277_v8   ;;  %1170 = vperm.xlu0 %3510, %v4301_v46   ;;  %v1208_v39 = vmul.f32 1.442695, %v1190_v34 }
 0x1da   : > { %v1921_v15 = vmul.f32 1.442695, %v1904_v32  ;;  %v3536_v36 = vpop.eup %3535 }
 0x1dc   : > { %3537 = vpow2.f32 %v1921_v15 }
 0x1dd   : > { %3539 = vpow2.f32 %v1208_v39 }
 0x1df   : > { %v1836_v33 = vpop.permute.xlu2 %1835 }
 0x1e0   : > { %1165 = vperm.xlu1 %3508, %v4280_v48   ;;  %1185 = vperm.xlu0 %3510, %v4344_v14   ;;  %v1905_v13 = vsub.f32 %v3911_v44, %v1836_v33  ;;  %v1723_v44 = vld [vmem:[#allocation4 + $0x60] sm:$0xff] }
 0x1e2   : > { %v3538_v3 = vpop.eup %3537  ;;  %v1923_v32 = vmul.f32 1.442695, %v1905_v13 }
 0x1e3   : > { %v2063_v41 = vpack.c.bf16 %v3538_v3, %v3536_v36  ;;  %v3540_v42 = vpop.eup %3539  ;;  %v4954_v36 = vsub.f32 %v4068_v37, %v4071_v40  ;;  %v4956_v40 = vsub.f32 %v4123_v38, %v4128_v54  ;;  %v4403_v54 = vpop.permute.xlu0 %1264 }
 0x1e5   : > { %1160 = vperm.xlu2 %3509, %v4260_v23   ;;  %2143 = vmatmul.bf16.vlgmr.msrb.gmra.mxu2 %v2063_v41  ;;  %v1791_v3 = vmul.f32 1.442695, %v4954_v36 }
 0x1e7   : > { %v1126_v12 = vpop.permute.xlu2 %1125 }
 0x1e8   : > { %v1191_v25 = vsub.f32 %v3921_v49, %v1126_v12 }
 0x1ea   : > { %v1210_v27 = vmul.f32 1.442695, %v1191_v25 }
 0x1ec   : > { %3541 = vpow2.f32 %v1210_v27 }
 0x1ed   : > { %1175 = vperm.xlu2 %3509, %v4316_v16   ;;  %3543 = vpow2.f32 %v1923_v32 }
 0x1ef   : > { %v1841_v15 = vpop.permute.xlu2 %1840 }
 0x1f0   : > { %v1906_v14 = vsub.f32 %v3916_v47, %v1841_v15  ;;  %v4955_v47 = vsub.f32 %v4107_v19, %v4117_v29  ;;  %v4957_v19 = vsub.f32 %v4161_v56, %v4169_v28  ;;  %v4958_v15 = vsub.f32 %v4196_v58, %v4208_v43 }
 0x1f1   : > { %v4959_v56 = vsub.f32 %v4228_v30, %v4234_v24 }
 0x1f2   : > { %v3542_v20 = vpop.eup %3541  ;;  %v1925_v34 = vmul.f32 1.442695, %v1906_v14  ;;  %v1082_v39 = vmul.f32 1.442695, %v4955_v47  ;;  %v1084_v14 = vmul.f32 1.442695, %v4956_v40 }
 0x1f3   : > { %v1349_v49 = vpack.c.bf16 %v3542_v20, %v3540_v42  ;;  %v3544_v33 = vpop.eup %3543  ;;  %v1801_v29 = vmul.f32 1.442695, %v4957_v19  ;;  %v1805_v42 = vmul.f32 1.442695, %v4958_v15 }
 0x1f4   : > { %3545 = vpow2.f32 %v1925_v34 }
 0x1f5   : > { %1880 = vperm.xlu2 %3509, %v4298_v61   ;;  %1433 = vmatmul.bf16.gmra.mxu0 %v1349_v49  ;;  %3547 = vpow2.f32 %v1791_v3  ;;  %v1807_v3 = vmul.f32 1.442695, %v4959_v56 }
 0x1f6   : > { %3549 = vpow2.f32 %v1082_v39 }
 0x1f7   : > { %3551 = vpow2.f32 %v1084_v14  ;;  %v1136_v20 = vpop.permute.xlu2 %1135 }
 0x1f8   : > { %3553 = vpow2.f32 %v1801_v29  ;;  %v1193_v28 = vsub.f32 %v3936_v55, %v1136_v20 }
 0x1f9   : > { %3555 = vpow2.f32 %v1805_v42 }
 0x1fa   : > { %v3546_v41 = vpop.eup %3545  ;;  %v1752_v12 = vpop.xlane.xlu1 %1751  ;;  %v1214_v34 = vmul.f32 1.442695, %v1193_v28  ;;  %3557 = vpow2.f32 %v1807_v3 }
 0x1fb   : > { %v1771_v25 = vmax.f32 %v1723_v44, %v1752_v12  ;;  %v2064_v27 = vpack.c.bf16 %v3546_v41, %v3544_v33  ;;  %v3548_v37 = vpop.eup %3547  ;;  %v1846_v33 = vpop.permute.xlu0 %1845  ;;  %v1786_v41 = vsub.f32 %v4292_v63, %v4298_v61 }
 0x1fc   : > { %v3550_v13 = vpop.eup %3549  ;;  %v1907_v39 = vsub.f32 %v3930_v52, %v1846_v33  ;;  %3559 = vpow2.f32 %v1214_v34 }
 0x1fd   : > { %2228 = vst.msk [vmem:[#allocation4 + $0x60] sm:$0xff] %vm730_vm1, %v1771_v25  ;;  %1885 = vperm.xlu1 %3508, %v1771_v25   ;;  %1969 = vperm.xlu2 %3509, %v3548_v37   ;;  %v3552_v32 = vpop.eup %3551  ;;  %v1813_v55 = vmul.f32 1.442695, %v1786_v41  ;;  %v1787_v14 = vsub.f32 %v1723_v44, %v1771_v25 }
 0x1fe   : > { %2148 = vmatmul.bf16.gmra.mxu2 %v2064_v27  ;;  %v3554_v36 = vpop.eup %3553  ;;  %v1927_v24 = vmul.f32 1.442695, %v1907_v39 }
 0x1ff   : > { %v3556_v58 = vpop.eup %3555  ;;  %v1146_v12 = vpop.permute.xlu2 %1145  ;;  %v1815_v19 = vmul.f32 1.442695, %v1787_v14  ;;  %v4961_v14 = vsub.f32 %v4142_v4, %v4148_v17 }
 0x200   : > { %v3558_v27 = vpop.eup %3557  ;;  %v1195_v52 = vsub.f32 %v3955_v62, %v1146_v12 }
 0x202   : > { %v3560_v40 = vpop.eup %3559  ;;  %v1218_v29 = vmul.f32 1.442695, %v1195_v52 }
 0x205   : > { %1269 = vperm.xlu2 %3509, %v3550_v13   ;;  %1890 = vperm.xlu1 %3508, %v4341_v50   ;;  %v4414_v13 = vpop.permute.xlu0 %1865 }
 0x206   : > { %v1911_v52 = vsub.f32 %v3972_v5, %v4414_v13 }
 0x207   : > { %v1861_v42 = vpop.permute.xlu2 %1860 }
 0x208   : > { %v1910_v25 = vsub.f32 %v3961_v0, %v1861_v42  ;;  %v4960_v0 = vsub.f32 %v4095_v6, %v4098_v9  ;;  %v1935_v42 = vmul.f32 1.442695, %v1911_v52 }
 0x20a   : > { %v1933_v56 = vmul.f32 1.442695, %v1910_v25  ;;  %v1795_v39 = vmul.f32 1.442695, %v4960_v0  ;;  %v4971_v0 = vld [vmem:[#allocation21_spill] sm:$0xff] }
 0x20d   : > { %1274 = vperm.xlu2 %3509, %v3552_v32   ;;  %1180 = vperm.xlu1 %3508, %v4329_v21   ;;  %v1156_v62 = vpop.permute.xlu0 %1155 }
 0x20e   : > { %v1197_v41 = vsub.f32 %v3976_v7, %v1156_v62 }
 0x212   : > { %v4401_v38 = vpop.permute.xlu1 %1259 }
 0x215   : > { %1994 = vperm.xlu2 %3509, %v3554_v36  }
 0x21a   : > { %v1131_v49 = vpop.permute.xlu1 %1130 }
 0x21b   : > { %v1192_v43 = vsub.f32 %v3926_v51, %v1131_v49 }
 0x21d   : > { %v1212_v47 = vmul.f32 1.442695, %v1192_v43  ;;  %2004 = vperm.xlu2 %3509, %v3556_v58   ;;  %v4420_v58 = vld [vmem:[#allocation4 + $0x70] sm:$0xff] }
 0x21f   : > { %3561 = vpow2.f32 %v1212_v47 }
 0x220   : > { %3563 = vpow2.f32 %v1813_v55 }
 0x221   : > { %3565 = vpow2.f32 %v1927_v24 }
 0x222   : > { %v1851_v30 = vpop.permute.xlu1 %1850 }
 0x223   : > { %v1908_v37 = vsub.f32 %v3946_v59, %v1851_v30 }
 0x225   : > { %v3562_v51 = vpop.eup %3561  ;;  %v1929_v61 = vmul.f32 1.442695, %v1908_v37  ;;  %2009 = vperm.xlu2 %3509, %v3558_v27   ;;  %v3763_v37 = vmov 8  }
 0x226   : > { %v1350_v63 = vpack.c.bf16 %v3560_v40, %v3562_v51  ;;  %v3564_v15 = vpop.eup %3563  ;;  %v4436_v51 = vld [vmem:[#allocation4 + $0x78] sm:$0xff] }
 0x227   : > { %3567 = vpow2.f32 %v1929_v61  ;;  %v3566_v20 = vpop.eup %3565  ;;  %v1086_v61 = vmul.f32 1.442695, %v4961_v14 }
 0x228   : > { %1438 = vmatmul.bf16.gmra.mxu0 %v1350_v63  ;;  %3569 = vpow2.f32 %v1815_v19 }
 0x229   : > { %3571 = vpow2.f32 %v1218_v29 }
 0x22a   : > { %v1141_v32 = vpop.permute.xlu1 %1140 }
 0x22b   : > { %v1194_v59 = vsub.f32 %v3941_v57, %v1141_v32 }
 0x22d   : > { %v3568_v36 = vpop.eup %3567  ;;  %v1216_v44 = vmul.f32 1.442695, %v1194_v59  ;;  %2024 = vperm.xlu2 %3509, %v3564_v15   ;;  %v4963_v59 = vsub.f32 %v4145_v11, %v4155_v31  ;;  %v4968_v31 = vld [vmem:[#allocation26_spill] sm:$0xff] }
 0x22e   : > { %v2065_v28 = vpack.c.bf16 %v3568_v36, %v3566_v20  ;;  %v3570_v34 = vpop.eup %3569  ;;  %v4964_v36 = vld [vmem:[#allocation18_spill] sm:$0xff] }
 0x22f   : > { %3573 = vpow2.f32 %v1216_v44  ;;  %v3572_v33 = vpop.eup %3571  ;;  %v1088_v20 = vmul.f32 1.442695, %v4963_v59  ;;  %v4965_v44 = vld [vmem:[#allocation19_spill] sm:$0xff]  ;;  %v4980_v59 = vld [vmem:[#allocation12_spill] sm:$0xff] }
 0x230   : > { %2153 = vmatmul.bf16.gmra.mxu2 %v2065_v28  ;;  %3575 = vpow2.f32 %v1933_v56  ;;  %v4966_v25 = vsub.f32 %v4964_v36, %v4965_v44 }
 0x232   : > { %v1856_v3 = vpop.permute.xlu1 %1855  ;;  %v1797_v28 = vmul.f32 1.442695, %v4966_v25  ;;  %v4981_v25 = vld [vmem:[#allocation31_spill] sm:$0xff] }
 0x233   : > { %v1909_v49 = vsub.f32 %v3950_v60, %v1856_v3  ;;  %v1222_v60 = vmul.f32 1.442695, %v1197_v41 }
 0x235   : > { %v3574_v43 = vpop.eup %3573  ;;  %v1931_v57 = vmul.f32 1.442695, %v1909_v49  ;;  %2029 = vperm.xlu2 %3509, %v3570_v34   ;;  %v4967_v49 = vld [vmem:[#allocation9_spill] sm:$0xff] }
 0x236   : > { %v1351_v47 = vpack.c.bf16 %v3572_v33, %v3574_v43  ;;  %v3576_v6 = vpop.eup %3575  ;;  %v4969_v43 = vsub.f32 %v4968_v31, %v4211_v26  ;;  %v4974_v26 = vld [vmem:[#allocation10_spill] sm:$0xff] }
 0x237   : > { %3577 = vpow2.f32 %v1931_v57  ;;  %v1756_v55 = vpop.xlane.xlu0 %1755 }
 0x238   : > { %v4427_v12 = vmax.f32 %v4420_v58, %v1756_v55  ;;  %1443 = vmatmul.bf16.vlgmr.msra.gmra.mxu1 %v1351_v47  ;;  %3579 = vpow2.f32 %v1795_v39  ;;  %v1092_v57 = vmul.f32 1.442695, %v4969_v43  ;;  %v4970_v47 = vld [vmem:[#allocation20_spill] sm:$0xff] }
 0x239   : > { %3581 = vpow2.f32 %v1222_v60  ;;  %v4972_v39 = vsub.f32 %v4970_v47, %v4971_v0 }
 0x23a   : > { %v1789_v24 = vsub.f32 %v4420_v58, %v4427_v12  ;;  %2230 = vst.msk [vmem:[#allocation4 + $0x70] sm:$0xff] %vm730_vm1, %v4427_v12  ;;  %v1151_v30 = vpop.permute.xlu1 %1150  ;;  %1895 = vperm.xlu0 %3510, %v4427_v12  }
 0x23b   : > { %v1196_v7 = vsub.f32 %v3965_v2, %v1151_v30  ;;  %v4962_v2 = vsub.f32 %v4077_v45, %v4082_v53  ;;  %v1799_v55 = vmul.f32 1.442695, %v4972_v39 }
 0x23d   : > { %v3578_v9 = vpop.eup %3577  ;;  %v1220_v27 = vmul.f32 1.442695, %v1196_v7  ;;  %3511 = vset.pattern.permute.xlu2 %v3763_v37  ;;  %v1793_v63 = vmul.f32 1.442695, %v4962_v2 }
 0x23e   : > { %v2066_v40 = vpack.c.bf16 %v3576_v6, %v3578_v9  ;;  %v3580_v29 = vpop.eup %3579  ;;  %v1332_v9 = vmul.f32 0.0, %v4367_v1  ;;  %v4978_v1 = vld [vmem:[#allocation30_spill] sm:$0xff] }
 0x23f   : > { %3583 = vpow2.f32 %v1220_v27  ;;  %v3582_v45 = vpop.eup %3581 }
 0x240   : > { %2158 = vmatmul.bf16.vlgmr.msra.gmra.mxu3 %v2066_v40  ;;  %v1758_v19 = vpop.xlane.xlu2 %1757  ;;  %3585 = vpow2.f32 %v1086_v61  ;;  %v4973_v40 = vld [vmem:[#allocation11_spill] sm:$0xff] }
 0x241   : > { %v4447_v32 = vmax.f32 %v4436_v51, %v1758_v19  ;;  %3587 = vpow2.f32 %v1793_v63  ;;  %v4975_v19 = vld [vmem:[#allocation22_spill] sm:$0xff] }
 0x242   : > { %v1871_v15 = vpop.permute.xlu1 %1870  ;;  %1979 = vperm.xlu0 %3510, %v3580_v29   ;;  %3589 = vpow2.f32 %v1935_v42  ;;  %v4976_v29 = vld [vmem:[#allocation24_spill] sm:$0xff] }
 0x243   : > { %v1790_v4 = vsub.f32 %v4436_v51, %v4447_v32  ;;  %2231 = vst.msk [vmem:[#allocation4 + $0x78] sm:$0xff] %vm730_vm1, %v4447_v32  ;;  %v1912_v5 = vsub.f32 %v3983_v10, %v1871_v15  ;;  %1900 = vperm.xlu1 %3508, %v4447_v32   ;;  %v4977_v15 = vsub.f32 %v4975_v19, %v4976_v29  ;;  %v3449_v51 = vld [vmem:[%s4886_s9 + $0x18] sm:$0xff] }
 0x245   : > { %v3584_v53 = vpop.eup %3583  ;;  %v1937_v17 = vmul.f32 1.442695, %v1912_v5  ;;  %v1090_v42 = vmul.f32 1.442695, %v4977_v15  ;;  %v4979_v5 = vsub.f32 %v4978_v1, %v4257_v18 }
 0x246   : > { %v1352_v13 = vpack.c.bf16 %v3582_v45, %v3584_v53  ;;  %v3586_v10 = vpop.eup %3585 }
 0x247   : > { %3591 = vpow2.f32 %v1937_v17  ;;  %v3588_v56 = vpop.eup %3587  ;;  %v1809_v45 = vmul.f32 1.442695, %v4979_v5  ;;  %v4992_v5 = vld [vmem:[#allocation33_spill] sm:$0xff] }
 0x248   : > { %v1161_v62 = vpop.permute.xlu2 %1160  ;;  %1448 = vmatmul.bf16.gmra.mxu1 %v1352_v13  ;;  %3593 = vpow2.f32 %v1088_v20  ;;  %v3590_v34 = vpop.eup %3589 }
 0x249   : > { %3595 = vpow2.f32 %v1797_v28  ;;  %v1198_v33 = vsub.f32 %v4967_v49, %v1161_v62  ;;  %v1070_v28 = vsub.f32 %v4981_v25, %v4260_v23 }
 0x24a   : > { %v1876_v3 = vpop.permute.xlu1 %1875  ;;  %1279 = vperm.xlu0 %3510, %v3586_v10   ;;  %3597 = vpow2.f32 %v1092_v57  ;;  %v1171_v18 = vpop.permute.xlu0 %1170  ;;  %v4984_v57 = vld [vmem:[#allocation23_spill] sm:$0xff] }
 0x24b   : > { %1974 = vperm.xlu1 %3508, %v3588_v56   ;;  %v1224_v7 = vmul.f32 1.442695, %v1198_v33  ;;  %3599 = vpow2.f32 %v1799_v55  ;;  %v1913_v52 = vsub.f32 %v4974_v26, %v1876_v3  ;;  %v4982_v3 = vld [vmem:[#allocation14_spill] sm:$0xff]  ;;  %v1096_v33 = vmul.f32 1.442695, %v1070_v28 }
 0x24d   : > { %v3592_v11 = vpop.eup %3591  ;;  %3601 = vpow2.f32 %v1224_v7  ;;  %v1939_v53 = vmul.f32 1.442695, %v1913_v52 }
 0x24e   : > { %v2067_v41 = vpack.c.bf16 %v3592_v11, %v3590_v34  ;;  %v3594_v30 = vpop.eup %3593  ;;  %v4983_v11 = vld [vmem:[#allocation13_spill] sm:$0xff] }
 0x24f   : > { %v3596_v6 = vpop.eup %3595  ;;  %v1200_v31 = vsub.f32 %v4983_v11, %v1171_v18 }
 0x250   : > { %v1176_v60 = vpop.permute.xlu2 %1175  ;;  %2163 = vmatmul.bf16.gmra.mxu3 %v2067_v41  ;;  %v3598_v13 = vpop.eup %3597  ;;  %v4985_v41 = vld [vmem:[#allocation25_spill] sm:$0xff] }
 0x251   : > { %v3600_v36 = vpop.eup %3599  ;;  %v1201_v34 = vsub.f32 %v4982_v3, %v1176_v60  ;;  %v4986_v47 = vsub.f32 %v4984_v57, %v4985_v41  ;;  %v1228_v7 = vmul.f32 1.442695, %v1200_v31 }
 0x252   : > { %v1166_v27 = vpop.permute.xlu1 %1165  ;;  %1284 = vperm.xlu0 %3510, %v3594_v30   ;;  %v1186_v3 = vpop.permute.xlu0 %1185 }
 0x253   : > { %v1199_v14 = vsub.f32 %v4973_v40, %v1166_v27  ;;  %v1429_v61 = vpop.f32.mrf.mxu0  ;;  %1984 = vperm.xlu1 %3508, %v3596_v6   ;;  %v3602_v44 = vpop.eup %3601  ;;  %v1803_v0 = vmul.f32 1.442695, %v4986_v47  ;;  %v1230_v39 = vmul.f32 1.442695, %v1201_v34  ;;  %v4987_v6 = vld [vmem:[#allocation34_spill] sm:$0xff]  ;;  %v4989_v40 = vld [vmem:[#allocation28_spill] sm:$0xff] }
 0x254   : > { %v4471_v2 = vadd.f32 %v1429_v61, %v1332_v9  ;;  %v4988_v9 = vsub.f32 %v4987_v6, %v4301_v46  ;;  %v4993_v46 = vsub.f32 %v4992_v5, %v4280_v48  ;;  %v4995_v48 = vld [vmem:[#allocation37_spill] sm:$0xff]  ;;  %v4998_v34 = vld [vmem:[#allocation16_spill] sm:$0xff] }
 0x255   : > { %v1226_v63 = vmul.f32 1.442695, %v1199_v14  ;;  %v4990_v14 = vld [vmem:[#allocation29_spill] sm:$0xff] }
 0x256   : > { %3603 = vrcp.f32 %v4471_v2  ;;  %v1100_v27 = vmul.f32 1.442695, %v4988_v9  ;;  %v4991_v61 = vsub.f32 %v4989_v40, %v4990_v14  ;;  %v5003_v14 = vmov 0  }
 0x257   : > { %3605 = vpow2.f32 %v1226_v63 }
 0x258   : > { %v1881_v17 = vpop.permute.xlu2 %1880  ;;  %3607 = vpow2.f32 %v1090_v42  ;;  %v1094_v26 = vmul.f32 1.442695, %v4991_v61  ;;  %v1333_v42 = vmul.f32 0.0, %v4401_v38  ;;  %v1788_v38 = vsub.f32 %v4995_v48, %v4341_v50  ;;  %v4999_v50 = vld [vmem:[#allocation17_spill] sm:$0xff] }
 0x259   : > { %v1914_v20 = vsub.f32 %v4980_v59, %v1881_v17  ;;  %3609 = vpow2.f32 %v1809_v45  ;;  %v1098_v45 = vmul.f32 1.442695, %v4993_v46  ;;  %v1334_v59 = vmul.f32 0.0, %v4403_v54 }
 0x25a   : > { %1294 = vperm.xlu0 %3510, %v3598_v13   ;;  %3611 = vpow2.f32 %v1939_v53  ;;  %v1817_v11 = vmul.f32 1.442695, %v1788_v38  ;;  %v1203_v41 = vsub.f32 %v4999_v50, %v1186_v3 }
 0x25b   : > { %v1941_v62 = vmul.f32 1.442695, %v1914_v20  ;;  %1989 = vperm.xlu1 %3508, %v3600_v36   ;;  %v1431_v19 = vpop.f32.mrf.mxu0 }
 0x25c   : > { %v3604_v10 = vpop.eup %3603  ;;  %v4498_v17 = vadd.f32 %v1431_v19, %v1333_v42 }
 0x25d   : > { %v3606_v56 = vpop.eup %3605  ;;  %3613 = vpow2.f32 %v1941_v62  ;;  %2287 = vperm.xlu2 %3511, %v3604_v10   ;;  %v4996_v62 = vld [vmem:[#allocation32_spill] sm:$0xff] }
 0x25e   : > { %v1353_v49 = vpack.c.bf16 %v3606_v56, %v3602_v44  ;;  %v3608_v43 = vpop.eup %3607  ;;  %3615 = vpow2.f32 %v1096_v33  ;;  %v4994_v44 = vld [vmem:[#allocation27_spill] sm:$0xff]  ;;  %v4997_v10 = vsub.f32 %v4996_v62, %v4277_v8 }
 0x25f   : > { %v3610_v23 = vpop.eup %3609  ;;  %3617 = vpow2.f32 %v1803_v0  ;;  %v5000_v8 = vld [vmem:[#allocation35_spill] sm:$0xff] }
 0x260   : > { %1453 = vmatmul.bf16.gmra.mxu1 %v1353_v49  ;;  %v3612_v55 = vpop.eup %3611  ;;  %3619 = vpow2.f32 %v1230_v39  ;;  %v1811_v54 = vmul.f32 1.442695, %v4997_v10  ;;  %v5001_v47 = vsub.f32 %v5000_v8, %v4316_v16  ;;  %v1970_v9 = vpop.permute.xlu2 %1969 }
 0x261   : > { %3621 = vpow2.f32 %v1228_v7 }
 0x262   : > { %2014 = vperm.xlu0 %3510, %v3610_v23   ;;  %3623 = vpow2.f32 %v1100_v27  ;;  %v1102_v0 = vmul.f32 1.442695, %v5001_v47  ;;  %v1234_v23 = vmul.f32 1.442695, %v1203_v41  ;;  %v3443_v47 = vld [vmem:[%s4885_s8 + $0x28] sm:$0xff] }
 0x263   : > { %v3614_v30 = vpop.eup %3613  ;;  %1289 = vperm.xlu1 %3508, %v3608_v43   ;;  %3625 = vpow2.f32 %v1094_v26  ;;  %v2047_v26 = vmul.f32 0.0, %v1970_v9 }
 0x264   : > { %v2068_v60 = vpack.c.bf16 %v3614_v30, %v3612_v55  ;;  %v3616_v52 = vpop.eup %3615  ;;  %3627 = vpow2.f32 %v1098_v45  ;;  %v5002_v30 = vld [vmem:[#allocation15_spill] sm:$0xff] }
 0x265   : > { %v3618_v63 = vpop.eup %3617  ;;  %3629 = vrcp.f32 %v4498_v17 }
 0x266   : > { %2168 = vmatmul.bf16.gmra.mxu3 %v2068_v60  ;;  %v3620_v29 = vpop.eup %3619 }
 0x267   : > { %v3622_v15 = vpop.eup %3621 }
 0x268   : > { %v1354_v1 = vpack.c.bf16 %v3620_v29, %v3622_v15  ;;  %v3624_v13 = vpop.eup %3623  ;;  %v2144_v16 = vpop.f32.mrf.mxu2 }
 0x269   : > { %v3626_v20 = vpop.eup %3625  ;;  %v4519_v19 = vadd.f32 %v2144_v16, %v2047_v26  ;;  %v1270_v42 = vpop.permute.xlu2 %1269 }
 0x26a   : > { %1304 = vperm.xlu0 %3510, %v3616_v52   ;;  %v3628_v33 = vpop.eup %3627  ;;  %v1335_v5 = vmul.f32 0.0, %v1270_v42 }
 0x26b   : > { %1999 = vperm.xlu1 %3508, %v3618_v63   ;;  %v3630_v31 = vpop.eup %3629 }
 0x26f   : > { %v1886_v53 = vpop.permute.xlu1 %1885 }
 0x270   : > { %1458 = vmatmul.bf16.gmra.mxu1 %v1354_v1  ;;  %v1915_v25 = vsub.f32 %v4994_v44, %v1886_v53 }
 0x272   : > { %v1434_v36 = vpop.f32.mrf.mxu0  ;;  %1314 = vperm.xlu0 %3510, %v3624_v13   ;;  %v1943_v18 = vmul.f32 1.442695, %v1915_v25 }
 0x273   : > { %v4502_v28 = vadd.f32 %v1434_v36, %v1334_v59  ;;  %1299 = vperm.xlu1 %3508, %v3626_v20   ;;  %v1275_v59 = vpop.permute.xlu2 %1274  ;;  %v2146_v20 = vpop.f32.mrf.mxu2 }
 0x275   : > { %3631 = vrcp.f32 %v4502_v28 }
 0x276   : > { %3633 = vpow2.f32 %v1811_v54 }
 0x277   : > { %v1891_v56 = vpop.permute.xlu1 %1890  ;;  %3635 = vpow2.f32 %v1943_v18  ;;  %v3445_v18 = vld [vmem:[%s4885_s8 + $0x38] sm:$0xff] }
 0x278   : > { %v1916_v49 = vsub.f32 %v4998_v34, %v1891_v56  ;;  %2784 = vmatpush.bf16.msrb.mxu3 %v3445_v18 }
 0x27a   : > { %v1945_v43 = vmul.f32 1.442695, %v1916_v49  ;;  %3512 = vset.pattern.permute.xlu0 %v3763_v37  ;;  %v1436_v1 = vpop.f32.mrf.mxu0  ;;  %v5004_v49 = vld [vmem:[#allocation38_spill] sm:$0xff] }
 0x27b   : > { %v3632_v57 = vpop.eup %3631  ;;  %1309 = vperm.xlu1 %3508, %v3628_v33   ;;  %2292 = vperm.xlu0 %3512, %v3630_v31   ;;  %v4523_v46 = vadd.f32 %v1436_v1, %v1335_v5  ;;  %v4532_v56 = vpop.permute.xlu2 %1994 }
 0x27c   : > { %3637 = vpow2.f32 %v1945_v43  ;;  %2297 = vperm.xlu2 %3511, %v3632_v57   ;;  %v3634_v55 = vpop.eup %3633 }
 0x27d   : > { %3639 = vpow2.f32 %v1817_v11  ;;  %v3636_v60 = vpop.eup %3635 }
 0x27e   : > { %3641 = vpow2.f32 %v1102_v0 }
 0x27f   : > { %v1181_v39 = vpop.permute.xlu1 %1180  ;;  %3643 = vpow2.f32 %v1234_v23 }
 0x280   : > { %v1202_v7 = vsub.f32 %v5002_v30, %v1181_v39  ;;  %v5007_v30 = vld [vmem:[#allocation36_spill] sm:$0xff] }
 0x281   : > { %v2149_v10 = vpop.f32.mrf.mxu2 }
 0x282   : > { %v3638_v6 = vpop.eup %3637  ;;  %v1232_v27 = vmul.f32 1.442695, %v1202_v7  ;;  %v1074_v7 = vsub.f32 %v5007_v30, %v4329_v21 }
 0x283   : > { %v3640_v40 = vpop.eup %3639  ;;  %2019 = vperm.xlu1 %3508, %v3634_v55   ;;  %3513 = vset.pattern.permute.xlu0 %v5003_v14  ;;  %v2069_v61 = vpack.c.bf16 %v3638_v6, %v3636_v60  ;;  %v4552_v60 = vpop.permute.xlu2 %2004 }
 0x284   : > { %3645 = vpow2.f32 %v1232_v27  ;;  %2034 = vperm.xlu0 %3513, %v3640_v40   ;;  %v3642_v52 = vpop.eup %3641  ;;  %v3442_v27 = vld [vmem:[%s4885_s8 + $0x20] sm:$0xff]  ;;  %v1104_v26 = vmul.f32 1.442695, %v1074_v7 }
 0x285   : > { %2173 = vmatmul.bf16.gmra.mxu3 %v2069_v61  ;;  %v3644_v63 = vpop.eup %3643  ;;  %3647 = vrcp.f32 %v4519_v19  ;;  %v1336_v61 = vmul.f32 0.0, %v1275_v59 }
 0x286   : > { %3649 = vrcp.f32 %v4523_v46 }
 0x289   : > { %v2151_v42 = vpop.f32.mrf.mxu2 }
 0x28a   : > { %v3646_v29 = vpop.eup %3645 }
 0x28b   : > { %1319 = vperm.xlu1 %3508, %v3642_v52   ;;  %v1355_v15 = vpack.c.bf16 %v3644_v63, %v3646_v29  ;;  %v3648_v45 = vpop.eup %3647  ;;  %v3441_v29 = vld [vmem:[%s4885_s8 + $0x18] sm:$0xff] }
 0x28c   : > { %3515 = vset.pattern.permute.xlu0 %v3763_v37  ;;  %v3650_v53 = vpop.eup %3649 }
 0x28d   : > { %1463 = vmatmul.bf16.gmra.mxu1 %v1355_v15 }
 0x293   : > { %3514 = vset.pattern.permute.xlu1 %v3763_v37 }
 0x294   : > { %2399 = vperm.xlu1 %3514, %v3648_v45   ;;  %v3440_v45 = vld [vmem:[%s4885_s8 + $0x10] sm:$0xff] }
 0x29c   : > { %2302 = vperm.xlu1 %3514, %v3650_v53   ;;  %v4571_v53 = vpop.permute.xlu2 %2009 }
 0x2a5   : > { %v1439_v44 = vpop.f32.mrf.mxu0 }
 0x2a6   : > { %v4561_v63 = vadd.f32 %v1439_v44, %v1336_v61 }
 0x2ac   : > { %v1896_v13 = vpop.permute.xlu0 %1895 }
 0x2ad   : > { %v1917_v36 = vsub.f32 %v4349_v35, %v1896_v13  ;;  %v3444_v35 = vld [vmem:[%s4885_s8 + $0x30] sm:$0xff]  ;;  %v1441_v41 = vpop.f32.mrf.mxu0 }
 0x2ae   : > { %2785 = vmatpush.bf16.msrb.mxu3 %v3444_v35 }
 0x2af   : > { %v1947_v25 = vmul.f32 1.442695, %v1917_v36 }
 0x2b1   : > { %3651 = vpow2.f32 %v1947_v25 }
 0x2b2   : > { %2786 = vmatpush.bf16.msrb.mxu3 %v3443_v47  ;;  %v2052_v47 = vmul.f32 0.0, %v4532_v56 }
 0x2b4   : > { %v1980_v48 = vpop.permute.xlu0 %1979 }
 0x2b5   : > { %v2049_v38 = vmul.f32 0.0, %v1980_v48  ;;  %v1901_v62 = vpop.permute.xlu1 %1900  ;;  %v1444_v9 = vpop.f32.mrf.mxu1  ;;  %v3439_v48 = vld [vmem:[%s4885_s8 + $0x8] sm:$0xff] }
 0x2b6   : > { %v1918_v54 = vsub.f32 %v4364_v22, %v1901_v62  ;;  %v5005_v22 = vld [vmem:[#allocation39_spill] sm:$0xff]  ;;  %2787 = vmatpush.bf16.msrb.mxu3 %v3442_v27  ;;  %v2154_v62 = vpop.f32.mrf.mxu2 }
 0x2b7   : > { %v4534_v3 = vadd.f32 %v2149_v10, %v2049_v38  ;;  %v5006_v33 = vsub.f32 %v5004_v49, %v5005_v22  ;;  %v3652_v50 = vpop.eup %3651 }
 0x2b8   : > { %v1949_v34 = vmul.f32 1.442695, %v1918_v54 }
 0x2b9   : > { %3653 = vrcp.f32 %v4534_v3  ;;  %v1106_v11 = vmul.f32 1.442695, %v5006_v33  ;;  %v4593_v33 = vpop.permute.xlu2 %2024 }
 0x2ba   : > { %3655 = vpow2.f32 %v1949_v34  ;;  %2788 = vmatpush.bf16.msrb.mxu3 %v3441_v29  ;;  %v3438_v34 = vld [vmem:[%s4885_s8] sm:$0xff] }
 0x2bb   : > { %3657 = vpow2.f32 %v1106_v11 }
 0x2bc   : > { %v1280_v31 = vpop.permute.xlu0 %1279 }
 0x2bd   : > { %v1337_v43 = vmul.f32 0.0, %v1280_v31  ;;  %v1975_v57 = vpop.permute.xlu1 %1974  ;;  %v1446_v13 = vpop.f32.mrf.mxu1 }
 0x2be   : > { %v2048_v8 = vmul.f32 0.0, %v1975_v57  ;;  %2789 = vmatpush.bf16.msrb.mxu3 %v3440_v45 }
 0x2bf   : > { %v3654_v0 = vpop.eup %3653  ;;  %v4546_v23 = vadd.f32 %v1441_v41, %v1337_v43 }
 0x2c0   : > { %v3656_v39 = vpop.eup %3655  ;;  %v4548_v55 = vadd.f32 %v2146_v20, %v2048_v8  ;;  %2409 = vperm.xlu1 %3514, %v3654_v0   ;;  %v2156_v8 = vpop.f32.mrf.mxu2 }
 0x2c1   : > { %3659 = vrcp.f32 %v4546_v23  ;;  %v2070_v6 = vpack.c.bf16 %v3656_v39, %v3652_v50  ;;  %v3658_v52 = vpop.eup %3657  ;;  %v4601_v39 = vadd.f32 %v2156_v8, %v2052_v47  ;;  %v4603_v27 = vpop.permute.xlu2 %2029 }
 0x2c2   : > { %3661 = vrcp.f32 %v4548_v55  ;;  %2790 = vmatpush.bf16.msrb.mxu3 %v3439_v48 }
 0x2c3   : > { %v4559_v40 = vpop.f32.mrf.mxu3  ;;  %2178 = vmatmul.bf16.gmra.mxu3 %v2070_v6  ;;  %3663 = vpow2.f32 %v1104_v26 }
 0x2c4   : > { %v1285_v16 = vpop.permute.xlu0 %1284  ;;  %3665 = vrcp.f32 %v4561_v63 }
 0x2c5   : > { %v1985_v21 = vpop.permute.xlu1 %1984  ;;  %v1338_v18 = vmul.f32 0.0, %v1285_v16  ;;  %v1449_v43 = vpop.f32.mrf.mxu1 }
 0x2c6   : > { %v2050_v5 = vmul.f32 0.0, %v1985_v21  ;;  %2791 = vmatpush.bf16.msrb.mxu3 %v3438_v34 }
 0x2c7   : > { %v3660_v15 = vpop.eup %3659  ;;  %v4591_v49 = vadd.f32 %v1444_v9, %v1338_v18 }
 0x2c8   : > { %v3662_v1 = vpop.eup %3661  ;;  %3517 = vset.pattern.permute.xlu1 %v5003_v14  ;;  %2312 = vperm.xlu0 %3515, %v3660_v15   ;;  %v4573_v20 = vadd.f32 %v2151_v42, %v2050_v5 }
 0x2c9   : > { %2404 = vperm.xlu2 %3511, %v3662_v1   ;;  %1329 = vperm.xlu1 %3517, %v3658_v52   ;;  %v3664_v38 = vpop.eup %3663  ;;  %v1819_v52 = vmul.f32 1.442695, %v1789_v24  ;;  %v2288_v5 = vpop.permute.xlu2 %2287  ;;  %v4629_v24 = vstv %s2235_s19 }
 0x2ca   : > { %v3666_v10 = vpop.eup %3665  ;;  %3667 = vrcp.f32 %v4573_v20  ;;  %v2365_v12 = vmul.f32 %v2288_v5, %v4471_v2  ;;  %v2055_v2 = vmul.f32 0.0, %v4571_v53  ;;  %v3452_v53 = vld [vmem:[%s4886_s9 + $0x30] sm:$0xff] }
 0x2cb   : > { %v4575_v36 = vpop.f32.mrf.mxu3 }
 0x2cc   : > { %v1295_v59 = vpop.permute.xlu0 %1294  ;;  %v2510_v18 = vmul.f32 %v4629_v24, %v2365_v12  ;;  %v3448_v12 = vld [vmem:[%s4886_s9 + $0x10] sm:$0xff] }
 0x2cd   : > { %v1990_v44 = vpop.permute.xlu1 %1989  ;;  %v1451_v16 = vpop.f32.mrf.mxu1  ;;  %v1340_v56 = vmul.f32 0.0, %v1295_v59 }
 0x2ce   : > { %v2051_v25 = vmul.f32 0.0, %v1990_v44  ;;  %v3453_v44 = vld [vmem:[%s4886_s9 + $0x38] sm:$0xff] }
 0x2cf   : > { %v4617_v42 = vadd.f32 %v1449_v43, %v1340_v56  ;;  %2687 = vmatpush.bf16.msrb.mxu1 %v3453_v44  ;;  %v2494_v43 = vld [vmem:[%s4639_s21 + $0x8] sm:$0xff]  ;;  %v1821_v56 = vmul.f32 1.442695, %v1790_v4 }
 0x2d0   : > { %v4580_v54 = vadd.f32 %v2154_v62, %v2051_v25  ;;  %3516 = vset.pattern.permute.xlu0 %v5003_v14  ;;  %v3668_v31 = vpop.eup %3667  ;;  %v2054_v25 = vmul.f32 0.0, %v4552_v60 }
 0x2d1   : > { %2307 = vperm.xlu2 %3511, %v3666_v10   ;;  %1324 = vperm.xlu0 %3516, %v3664_v38  }
 0x2d2   : > { %3669 = vrcp.f32 %v4580_v54  ;;  %3518 = vset.pattern.permute.xlu1 %v3763_v37  ;;  %v4646_v34 = vadd.f32 %v4575_v36, %v2054_v25 }
 0x2d3   : > { %v2164_v57 = vpop.f32.mrf.mxu3  ;;  %3671 = vrcp.f32 %v4591_v49  ;;  %2688 = vmatpush.bf16.msrb.mxu1 %v3452_v53 }
 0x2d4   : > { %v4589_v35 = vpop.permute.xlu0 %2014 }
 0x2d5   : > { %v1290_v22 = vpop.permute.xlu1 %1289  ;;  %v2056_v5 = vmul.f32 0.0, %v4589_v35  ;;  %v3447_v35 = vld [vmem:[%s4886_s9 + $0x8] sm:$0xff] }
 0x2d6   : > { %v1339_v11 = vmul.f32 0.0, %v1290_v22 }
 0x2d8   : > { %v3670_v50 = vpop.eup %3669  ;;  %v4595_v41 = vadd.f32 %v1446_v13, %v1339_v11  ;;  %v2493_v11 = vld [vmem:[%s4639_s21] sm:$0xff] }
 0x2d9   : > { %2414 = vperm.xlu2 %3511, %v3668_v31   ;;  %2419 = vperm.xlu1 %3518, %v3670_v50   ;;  %v3672_v6 = vpop.eup %3671  ;;  %v4650_v31 = vadd.f32 %v2164_v57, %v2055_v2 }
 0x2da   : > { %3673 = vrcp.f32 %v4595_v41  ;;  %3519 = vset.pattern.permute.xlu0 %v3763_v37 }
 0x2db   : > { %3675 = vrcp.f32 %v4601_v39  ;;  %v4609_v26 = vpop.f32.mrf.mxu3 }
 0x2dc   : > { %v1305_v0 = vpop.permute.xlu0 %1304  ;;  %v4689_v25 = vadd.f32 %v4609_v26, %v2056_v5  ;;  %v2059_v26 = vmul.f32 0.0, %v4603_v27  ;;  %v2543_v5 = vld [vmem:[%s4728_s16 + $0x8] sm:$0xff] }
 0x2dd   : > { %v2000_v30 = vpop.permute.xlu1 %1999  ;;  %v1454_v13 = vpop.f32.mrf.mxu1  ;;  %v1342_v58 = vmul.f32 0.0, %v1305_v0  ;;  %v2058_v0 = vmul.f32 0.0, %v4593_v33  ;;  %v3450_v33 = vld [vmem:[%s4886_s9 + $0x20] sm:$0xff] }
 0x2de   : > { %v2053_v7 = vmul.f32 0.0, %v2000_v30 }
 0x2df   : > { %v4642_v38 = vadd.f32 %v1454_v13, %v1342_v58 }
 0x2e0   : > { %v3674_v9 = vpop.eup %3673  ;;  %v4606_v61 = vadd.f32 %v4559_v40, %v2053_v7  ;;  %v3451_v7 = vld [vmem:[%s4886_s9 + $0x28] sm:$0xff] }
 0x2e1   : > { %2322 = vperm.xlu1 %3518, %v3674_v9   ;;  %2317 = vperm.xlu2 %3511, %v3672_v6   ;;  %v3676_v15 = vpop.eup %3675 }
 0x2e2   : > { %3677 = vrcp.f32 %v4606_v61  ;;  %2689 = vmatpush.bf16.msrb.mxu1 %v3451_v7 }
 0x2e3   : > { %3679 = vpow2.f32 %v1819_v52 }
 0x2e4   : > { %v4612_v21 = vpop.permute.xlu0 %1314 }
 0x2e5   : > { %v1300_v40 = vpop.permute.xlu1 %1299  ;;  %v1456_v36 = vpop.f32.mrf.mxu1 }
 0x2e6   : > { %v1341_v29 = vmul.f32 0.0, %v1300_v40  ;;  %2690 = vmatpush.bf16.msrb.mxu1 %v3450_v33 }
 0x2e8   : > { %v3678_v1 = vpop.eup %3677  ;;  %v4619_v45 = vadd.f32 %v1451_v16, %v1341_v29 }
 0x2e9   : > { %v4621_v59 = vpop.f32.mrf.mxu3  ;;  %2429 = vperm.xlu1 %3518, %v3678_v1   ;;  %2424 = vperm.xlu2 %3511, %v3676_v15   ;;  %v3680_v10 = vpop.eup %3679  ;;  %v1344_v1 = vmul.f32 0.0, %v4612_v21 }
 0x2ea   : > { %3681 = vrcp.f32 %v4619_v45  ;;  %2691 = vmatpush.bf16.msrb.mxu1 %v3449_v51 }
 0x2eb   : > { %3683 = vrcp.f32 %v4617_v42 }
 0x2ec   : > { %3685 = vrcp.f32 %v4642_v38 }
 0x2ed   : > { %v1310_v48 = vpop.permute.xlu1 %1309  ;;  %v2293_v62 = vpop.permute.xlu0 %2292  ;;  %3687 = vrcp.f32 %v4646_v34 }
 0x2ee   : > { %v2366_v60 = vmul.f32 %v2293_v62, %v4498_v17  ;;  %v2526_v17 = vadd.f32 %v2510_v18, %v2493_v11  ;;  %3689 = vrcp.f32 %v4650_v31  ;;  %v1343_v30 = vmul.f32 0.0, %v1310_v48  ;;  %v1459_v32 = vpop.f32.mrf.mxu1  ;;  %2692 = vmatpush.bf16.msrb.mxu1 %v3448_v12  ;;  %v2298_v62 = vpop.permute.xlu2 %2297 }
 0x2ef   : > { %v4683_v58 = vadd.f32 %v1459_v32, %v1344_v1  ;;  %v2542_v1 = vld [vmem:[%s4728_s16] sm:$0xff] }
 0x2f0   : > { %v3682_v22 = vpop.eup %3681  ;;  %v2511_v8 = vmul.f32 %v4629_v24, %v2366_v60  ;;  %v4673_v40 = vadd.f32 %v1456_v36, %v1343_v30 }
 0x2f1   : > { %v3684_v50 = vpop.eup %3683  ;;  %3520 = vset.pattern.permute.xlu1 %v5003_v14  ;;  %2332 = vperm.xlu0 %3519, %v3682_v22   ;;  %v2171_v47 = vpop.f32.mrf.mxu3 }
 0x2f2   : > { %2327 = vperm.xlu2 %3511, %v3684_v50   ;;  %2039 = vperm.xlu1 %3520, %v3680_v10   ;;  %v2527_v57 = vadd.f32 %v2511_v8, %v2494_v43  ;;  %v4665_v16 = vadd.f32 %v2171_v47, %v2058_v0  ;;  %v3686_v52 = vpop.eup %3685  ;;  %v2367_v43 = vmul.f32 %v2298_v62, %v4502_v28  ;;  %v2496_v47 = vld [vmem:[%s4639_s21 + $0x18] sm:$0xff] }
 0x2f3   : > { %v3688_v29 = vpop.eup %3687  ;;  %2693 = vmatpush.bf16.msrb.mxu1 %v3447_v35 }
 0x2f4   : > { %v2591_v9 = vpack.c.bf16 %v2527_v57, %v2526_v17  ;;  %v3690_v15 = vpop.eup %3689  ;;  %3691 = vrcp.f32 %v4665_v16  ;;  %v2512_v50 = vmul.f32 %v4629_v24, %v2367_v43  ;;  %v2495_v57 = vld [vmem:[%s4639_s21 + $0x10] sm:$0xff] }
 0x2f5   : > { %v2020_v6 = vpop.permute.xlu1 %2019  ;;  %3693 = vpow2.f32 %v1821_v56 }
 0x2f6   : > { %2792 = vmatmul.bf16.vlgmr.msrb.gmra.mxu3 %v2591_v9  ;;  %3695 = vrcp.f32 %v4673_v40  ;;  %v2057_v21 = vmul.f32 0.0, %v2020_v6  ;;  %v2035_v27 = vpop.permute.xlu0 %2034  ;;  %v1461_v36 = vpop.f32.mrf.mxu1  ;;  %v2528_v9 = vadd.f32 %v2512_v50, %v2495_v57 }
 0x2f7   : > { %3697 = vrcp.f32 %v4683_v58  ;;  %v2060_v8 = vmul.f32 0.0, %v2035_v27 }
 0x2f8   : > { %3699 = vrcp.f32 %v4689_v25  ;;  %v4702_v18 = vadd.f32 %v4621_v59, %v2057_v21 }
 0x2f9   : > { %2337 = vperm.xlu0 %3519, %v3686_v52  }
 0x2fa   : > { %2434 = vperm.xlu2 %3511, %v3688_v29   ;;  %3522 = vset.pattern.permute.xlu1 %v3763_v37  ;;  %v3692_v13 = vpop.eup %3691 }
 0x2fb   : > { %2439 = vperm.xlu1 %3522, %v3690_v15   ;;  %v3694_v44 = vpop.eup %3693  ;;  %v4722_v15 = vstv %s3314_s13 }
 0x2fc   : > { %v3696_v48 = vpop.eup %3695 }
 0x2fd   : > { %v1320_v4 = vpop.permute.xlu1 %1319  ;;  %v3698_v22 = vpop.eup %3697 }
 0x2fe   : > { %v3700_v11 = vpop.eup %3699  ;;  %v1345_v59 = vmul.f32 0.0, %v1320_v4 }
 0x300   : > { %v4714_v30 = vadd.f32 %v1461_v36, %v1345_v59  ;;  %v2497_v36 = vld [vmem:[%s4639_s21 + $0x20] sm:$0xff] }
 0x301   : > { %2454 = vperm.xlu0 %3519, %v3692_v13  }
 0x302   : > { %3521 = vset.pattern.permute.xlu2 %v5003_v14  ;;  %v3446_v14 = vld [vmem:[%s4886_s9] sm:$0xff] }
 0x303   : > { %2044 = vperm.xlu2 %3521, %v3694_v44   ;;  %2342 = vperm.xlu1 %3522, %v3696_v48  }
 0x304   : > { %2694 = vmatpush.bf16.msrb.mxu1 %v3446_v14  ;;  %v2545_v14 = vld [vmem:[%s4728_s16 + $0x18] sm:$0xff] }
 0x306   : > { %v2400_v2 = vpop.permute.xlu1 %2399 }
 0x307   : > { %v2477_v29 = vmul.f32 %v2400_v2, %v4519_v19 }
 0x308   : > { %v2174_v10 = vpop.f32.mrf.mxu3 }
 0x309   : > { %v4704_v60 = vadd.f32 %v2174_v10, %v2059_v26  ;;  %v2559_v32 = vmul.f32 %v4722_v15, %v2477_v29  ;;  %v2544_v10 = vld [vmem:[%s4728_s16 + $0x10] sm:$0xff] }
 0x30a   : > { %v1464_v21 = vpop.f32.mrf.mxu1 }
 0x30b   : > { %3701 = vrcp.f32 %v4704_v60  ;;  %3523 = vset.pattern.permute.xlu2 %v3763_v37  ;;  %2347 = vperm.xlu1 %3522, %v3698_v22   ;;  %v2575_v13 = vadd.f32 %v2559_v32, %v2542_v1  ;;  %v2546_v1 = vld [vmem:[%s4728_s16 + $0x20] sm:$0xff] }
 0x30c   : > { %2444 = vperm.xlu2 %3523, %v3700_v11   ;;  %3703 = vrcp.f32 %v4702_v18 }
 0x30e   : > { %v2303_v53 = vpop.permute.xlu1 %2302 }
 0x30f   : > { %v2368_v17 = vmul.f32 %v2303_v53, %v4523_v46 }
 0x310   : > { %v2176_v28 = vpop.f32.mrf.mxu3 }
 0x311   : > { %v3702_v0 = vpop.eup %3701  ;;  %v2513_v37 = vmul.f32 %v4629_v24, %v2368_v17  ;;  %v4717_v7 = vadd.f32 %v2176_v28, %v2060_v8  ;;  %v2498_v28 = vld [vmem:[%s4639_s21 + $0x28] sm:$0xff] }
 0x312   : > { %2459 = vperm.xlu0 %3519, %v3702_v0   ;;  %v3704_v6 = vpop.eup %3703  ;;  %v1466_v57 = vpop.f32.mrf.mxu1 }
 0x313   : > { %3705 = vrcp.f32 %v4717_v7  ;;  %v2529_v56 = vadd.f32 %v2513_v37, %v2496_v47 }
 0x314   : > { %2449 = vperm.xlu2 %3523, %v3704_v6   ;;  %3707 = vrcp.f32 %v4714_v30 }
 0x315   : > { %v2592_v46 = vpack.c.bf16 %v2529_v56, %v2528_v9 }
 0x317   : > { %2797 = vmatmul.bf16.gmra.mxu3 %v2592_v46 }
 0x319   : > { %v3706_v33 = vpop.eup %3705 }
 0x31a   : > { %2464 = vperm.xlu1 %3522, %v3706_v33   ;;  %v3708_v52 = vpop.eup %3707 }
 0x31c   : > { %2352 = vperm.xlu2 %3523, %v3708_v52  }
 0x323   : > { %v2405_v51 = vpop.permute.xlu2 %2404 }
 0x324   : > { %v2478_v4 = vmul.f32 %v2405_v51, %v4548_v55 }
 0x326   : > { %v2560_v19 = vmul.f32 %v4722_v15, %v2478_v4 }
 0x328   : > { %v2576_v12 = vadd.f32 %v2560_v19, %v2543_v5  ;;  %v2547_v5 = vld [vmem:[%s4728_s16 + $0x28] sm:$0xff] }
 0x32a   : > { %v2615_v44 = vpack.c.bf16 %v2576_v12, %v2575_v13 }
 0x32b   : > { %v2308_v48 = vpop.permute.xlu2 %2307 }
 0x32c   : > { %2695 = vmatmul.bf16.vlgmr.msrb.gmra.mxu1 %v2615_v44  ;;  %v2369_v11 = vmul.f32 %v2308_v48, %v4561_v63 }
 0x32e   : > { %v2514_v50 = vmul.f32 %v4629_v24, %v2369_v11 }
 0x330   : > { %v2530_v63 = vadd.f32 %v2514_v50, %v2497_v36  ;;  %v2549_v50 = vld [vmem:[%s4728_s16 + $0x38] sm:$0xff] }
 0x332   : > { %v2410_v35 = vpop.permute.xlu1 %2409 }
 0x333   : > { %v2479_v2 = vmul.f32 %v2410_v35, %v4534_v3  ;;  %v2415_v26 = vpop.permute.xlu2 %2414 }
 0x334   : > { %v2480_v62 = vmul.f32 %v2415_v26, %v4573_v20 }
 0x335   : > { %v2561_v55 = vmul.f32 %v4722_v15, %v2479_v2 }
 0x336   : > { %v2562_v22 = vmul.f32 %v4722_v15, %v2480_v62  ;;  %v2499_v62 = vld [vmem:[%s4639_s21 + $0x30] sm:$0xff] }
 0x337   : > { %v2577_v43 = vadd.f32 %v2561_v55, %v2544_v10  ;;  %v2500_v10 = vld [vmem:[%s4639_s21 + $0x38] sm:$0xff] }
 0x338   : > { %v2578_v27 = vadd.f32 %v2562_v22, %v2545_v14 }
 0x33a   : > { %v2313_v59 = vpop.permute.xlu0 %2312  ;;  %v2616_v53 = vpack.c.bf16 %v2578_v27, %v2577_v43 }
 0x33b   : > { %v2370_v3 = vmul.f32 %v2313_v59, %v4546_v23  ;;  %v1330_v8 = vpop.permute.xlu1 %1329  ;;  %v2318_v20 = vpop.permute.xlu2 %2317 }
 0x33c   : > { %v1347_v17 = vmul.f32 0.0, %v1330_v8  ;;  %2700 = vmatmul.bf16.gmra.mxu1 %v2616_v53  ;;  %v2371_v12 = vmul.f32 %v2318_v20, %v4591_v49  ;;  %v2548_v53 = vld [vmem:[%s4728_s16 + $0x30] sm:$0xff] }
 0x33d   : > { %v2515_v47 = vmul.f32 %v4629_v24, %v2370_v3 }
 0x33e   : > { %v4747_v0 = vadd.f32 %v1466_v57, %v1347_v17 }
 0x33f   : > { %v2531_v37 = vadd.f32 %v2515_v47, %v2498_v28 }
 0x340   : > { %3709 = vrcp.f32 %v4747_v0 }
 0x341   : > { %v2593_v6 = vpack.c.bf16 %v2531_v37, %v2530_v63 }
 0x343   : > { %v2425_v9 = vpop.permute.xlu2 %2424  ;;  %2802 = vmatmul.bf16.gmra.mxu3 %v2593_v6  ;;  %v1325_v23 = vpop.permute.xlu0 %1324 }
 0x344   : > { %v1346_v56 = vmul.f32 0.0, %v1325_v23  ;;  %v2482_v52 = vmul.f32 %v2425_v9, %v4601_v39  ;;  %v2501_v9 = vld [vmem:[%s4639_s21 + $0x40] sm:$0xff]  ;;  %v2502_v23 = vld [vmem:[%s4639_s21 + $0x48] sm:$0xff] }
 0x346   : > { %v3710_v46 = vpop.eup %3709  ;;  %v4750_v33 = vadd.f32 %v1464_v21, %v1346_v56  ;;  %v2564_v51 = vmul.f32 %v4722_v15, %v2482_v52  ;;  %v2516_v21 = vmul.f32 %v4629_v24, %v2371_v12  ;;  %v2179_v26 = vpop.f32.mrf.mxu3  ;;  %v2550_v12 = vld [vmem:[%s4728_s16 + $0x40] sm:$0xff] }
 0x347   : > { %2362 = vperm.xlu0 %3519, %v3710_v46  }
 0x348   : > { %3711 = vrcp.f32 %v4750_v33  ;;  %v2580_v39 = vadd.f32 %v2564_v51, %v2547_v5  ;;  %v2532_v49 = vadd.f32 %v2516_v21, %v2499_v62 }
 0x34b   : > { %v2420_v29 = vpop.permute.xlu1 %2419 }
 0x34c   : > { %v2481_v32 = vmul.f32 %v2420_v29, %v4580_v54  ;;  %v2328_v4 = vpop.permute.xlu2 %2327 }
 0x34e   : > { %v3712_v19 = vpop.eup %3711  ;;  %v2563_v13 = vmul.f32 %v4722_v15, %v2481_v32  ;;  %v2181_v20 = vpop.f32.mrf.mxu3 }
 0x34f   : > { %2357 = vperm.xlu2 %3523, %v3712_v19  }
 0x350   : > { %v2579_v44 = vadd.f32 %v2563_v13, %v2546_v1 }
 0x352   : > { %v2617_v48 = vpack.c.bf16 %v2580_v39, %v2579_v44  ;;  %v2551_v44 = vld [vmem:[%s4728_s16 + $0x48] sm:$0xff] }
 0x353   : > { %v2323_v35 = vpop.permute.xlu1 %2322 }
 0x354   : > { %v2372_v2 = vmul.f32 %v2323_v35, %v4595_v41  ;;  %v2435_v54 = vpop.permute.xlu2 %2434  ;;  %2705 = vmatmul.bf16.gmra.mxu1 %v2617_v48 }
 0x355   : > { %v2484_v14 = vmul.f32 %v2435_v54, %v4646_v34  ;;  %v2373_v34 = vmul.f32 %v2328_v4, %v4617_v42 }
 0x356   : > { %v2517_v55 = vmul.f32 %v4629_v24, %v2372_v2 }
 0x357   : > { %v2566_v27 = vmul.f32 %v4722_v15, %v2484_v14  ;;  %v2518_v47 = vmul.f32 %v4629_v24, %v2373_v34 }
 0x358   : > { %v2533_v22 = vadd.f32 %v2517_v55, %v2500_v10  ;;  %v2503_v10 = vld [vmem:[%s4639_s21 + $0x50] sm:$0xff]  ;;  %v2504_v55 = vld [vmem:[%s4639_s21 + $0x58] sm:$0xff] }
 0x359   : > { %v2582_v28 = vadd.f32 %v2566_v27, %v2549_v50  ;;  %v2534_v29 = vadd.f32 %v2518_v47, %v2501_v9  ;;  %v2552_v50 = vld [vmem:[%s4728_s16 + $0x50] sm:$0xff] }
 0x35a   : > { %v2594_v11 = vpack.c.bf16 %v2533_v22, %v2532_v49 }
 0x35b   : > { %v2430_v43 = vpop.permute.xlu1 %2429 }
 0x35c   : > { %v2483_v59 = vmul.f32 %v2430_v43, %v4606_v61  ;;  %2807 = vmatmul.bf16.gmra.mxu3 %v2594_v11 }
 0x35d   : > { %v2045_v41 = vpop.permute.xlu2 %2044 }
 0x35e   : > { %v2565_v3 = vmul.f32 %v4722_v15, %v2483_v59  ;;  %v2062_v8 = vmul.f32 0.0, %v2045_v41  ;;  %v2553_v41 = vld [vmem:[%s4728_s16 + $0x58] sm:$0xff] }
 0x360   : > { %v4772_v17 = vadd.f32 %v2181_v20, %v2062_v8  ;;  %v2581_v36 = vadd.f32 %v2565_v3, %v2548_v53 }
 0x362   : > { %3713 = vrcp.f32 %v4772_v17  ;;  %v2618_v57 = vpack.c.bf16 %v2582_v28, %v2581_v36  ;;  %v2505_v36 = vld [vmem:[%s4639_s21 + $0x60] sm:$0xff] }
 0x363   : > { %v2333_v61 = vpop.permute.xlu0 %2332 }
 0x364   : > { %v2374_v63 = vmul.f32 %v2333_v61, %v4619_v45  ;;  %v2040_v37 = vpop.permute.xlu1 %2039  ;;  %2710 = vmatmul.bf16.gmra.mxu1 %v2618_v57  ;;  %v2506_v61 = vld [vmem:[%s4639_s21 + $0x68] sm:$0xff] }
 0x365   : > { %v2061_v6 = vmul.f32 0.0, %v2040_v37 }
 0x366   : > { %v2519_v56 = vmul.f32 %v4629_v24, %v2374_v63  ;;  %v2445_v46 = vpop.permute.xlu2 %2444 }
 0x367   : > { %v4780_v42 = vadd.f32 %v2179_v26, %v2061_v6  ;;  %v2486_v45 = vmul.f32 %v2445_v46, %v4689_v25 }
 0x368   : > { %v3714_v52 = vpop.eup %3713  ;;  %v2535_v51 = vadd.f32 %v2519_v56, %v2502_v23  ;;  %v2554_v23 = vld [vmem:[%s4728_s16 + $0x60] sm:$0xff]  ;;  %v2555_v56 = vld [vmem:[%s4728_s16 + $0x68] sm:$0xff] }
 0x369   : > { %3715 = vrcp.f32 %v4780_v42  ;;  %2474 = vperm.xlu2 %3523, %v3714_v52   ;;  %v2568_v5 = vmul.f32 %v4722_v15, %v2486_v45 }
 0x36a   : > { %v2595_v32 = vpack.c.bf16 %v2535_v51, %v2534_v29 }
 0x36b   : > { %v2338_v4 = vpop.permute.xlu0 %2337  ;;  %v2584_v25 = vadd.f32 %v2568_v5, %v2551_v44 }
 0x36c   : > { %2812 = vmatmul.bf16.gmra.mxu3 %v2595_v32  ;;  %v2375_v48 = vmul.f32 %v2338_v4, %v4642_v38 }
 0x36d   : > { %v2440_v1 = vpop.permute.xlu1 %2439 }
 0x36e   : > { %v2485_v19 = vmul.f32 %v2440_v1, %v4650_v31  ;;  %v2450_v21 = vpop.permute.xlu2 %2449  ;;  %v2520_v62 = vmul.f32 %v4629_v24, %v2375_v48 }
 0x36f   : > { %v3716_v13 = vpop.eup %3715  ;;  %v2487_v38 = vmul.f32 %v2450_v21, %v4702_v18 }
 0x370   : > { %v2567_v39 = vmul.f32 %v4722_v15, %v2485_v19  ;;  %2469 = vperm.xlu1 %3522, %v3716_v13   ;;  %v2536_v22 = vadd.f32 %v2520_v62, %v2503_v10 }
 0x372   : > { %v2583_v35 = vadd.f32 %v2567_v39, %v2550_v12 }
 0x373   : > { %v2455_v54 = vpop.permute.xlu0 %2454 }
 0x374   : > { %v2619_v2 = vpack.c.bf16 %v2584_v25, %v2583_v35  ;;  %v2488_v14 = vmul.f32 %v2455_v54, %v4665_v16  ;;  %v2507_v54 = vld [vmem:[%s4639_s21 + $0x70] sm:$0xff] }
 0x375   : > { %v2343_v26 = vpop.permute.xlu1 %2342 }
 0x376   : > { %v2376_v31 = vmul.f32 %v2343_v26, %v4673_v40  ;;  %2715 = vmatmul.bf16.gmra.mxu1 %v2619_v2  ;;  %v2570_v43 = vmul.f32 %v4722_v15, %v2488_v14  ;;  %v2569_v40 = vmul.f32 %v4722_v15, %v2487_v38  ;;  %v2353_v53 = vpop.permute.xlu2 %2352  ;;  %v2508_v26 = vld [vmem:[%s4639_s21 + $0x78] sm:$0xff] }
 0x377   : > { %v2378_v8 = vmul.f32 %v2353_v53, %v4714_v30 }
 0x378   : > { %v2521_v49 = vmul.f32 %v4629_v24, %v2376_v31  ;;  %v2586_v3 = vadd.f32 %v2570_v43, %v2553_v41  ;;  %v2585_v18 = vadd.f32 %v2569_v40, %v2552_v50 }
 0x379   : > { %v2523_v28 = vmul.f32 %v4629_v24, %v2378_v8  ;;  %v2793_v45 = vpop.f32.mrf.mxu3 }
 0x37a   : > { %v2537_v11 = vadd.f32 %v2521_v49, %v2504_v55  ;;  %v2620_v34 = vpack.c.bf16 %v2586_v3, %v2585_v18 }
 0x37b   : > { %v2539_v37 = vadd.f32 %v2523_v28, %v2506_v61 }
 0x37c   : > { %v2596_v27 = vpack.c.bf16 %v2537_v11, %v2536_v22 }
 0x37d   : > { %v2348_v59 = vpop.permute.xlu1 %2347 }
 0x37e   : > { %2817 = vmatmul.bf16.gmra.mxu3 %v2596_v27  ;;  %v2377_v16 = vmul.f32 %v2348_v59, %v4683_v58 }
 0x380   : > { %v2522_v20 = vmul.f32 %v4629_v24, %v2377_v16 }
 0x381   : > { %v2795_v1 = vpop.f32.mrf.mxu3 }
 0x382   : > { %v2538_v47 = vadd.f32 %v2522_v20, %v2505_v36  ;;  %v2557_v36 = vld [vmem:[%s4728_s16 + $0x78] sm:$0xff] }
 0x384   : > { %v2460_v57 = vpop.permute.xlu0 %2459  ;;  %v2597_v6 = vpack.c.bf16 %v2539_v37, %v2538_v47 }
 0x385   : > { %v2489_v63 = vmul.f32 %v2460_v57, %v4704_v60  ;;  %v4816_v60 = vld [vmem:[%s4887_s10] ss:$0 sm:$0xff]  ;;  %v2556_v57 = vld [vmem:[%s4728_s16 + $0x70] sm:$0xff] }
 0x386   : > { %2720 = vmatmul.bf16.gmra.mxu1 %v2620_v34 }
 0x387   : > { %v2571_v30 = vmul.f32 %v4722_v15, %v2489_v63 }
 0x389   : > { %v2587_v52 = vadd.f32 %v2571_v30, %v2554_v23 }
 0x38c   : > { %v2465_v58 = vpop.permute.xlu1 %2464 }
 0x38d   : > { %v2490_v9 = vmul.f32 %v2465_v58, %v4717_v7 }
 0x38e   : > { %2822 = vmatmul.bf16.gmra.mxu3 %v2597_v6 }
 0x38f   : > { %v2572_v46 = vmul.f32 %v4722_v15, %v2490_v9 }
 0x391   : > { %v2588_v29 = vadd.f32 %v2572_v46, %v2555_v56 }
 0x393   : > { %v2621_v51 = vpack.c.bf16 %v2588_v29, %v2587_v52 }
 0x396   : > { %2725 = vmatmul.bf16.gmra.mxu1 %v2621_v51 }
 0x39a   : > { %v2798_v39 = vpop.f32.mrf.mxu3 }
 0x3a2   : > { %v2800_v14 = vpop.f32.mrf.mxu3 }
 0x3a9   : > { %v2696_v32 = vpop.f32.mrf.mxu1  ;;  %v2358_v13 = vpop.permute.xlu2 %2357 }
 0x3aa   : > { %v2794_v4 = vadd.f32 %v2793_v45, %v2696_v32  ;;  %v2379_v44 = vmul.f32 %v2358_v13, %v4750_v33 }
 0x3ac   : > { %v2837_v7 = vadd.f32 %v4816_v60, %v2794_v4  ;;  %v2524_v25 = vmul.f32 %v4629_v24, %v2379_v44 }
 0x3ae   : > { %2853 = vst [vmem:[%s4822_s24] sm:$0xff] %v2837_v7  ;;  %v2540_v10 = vadd.f32 %v2524_v25, %v2507_v54 }
 0x3b1   : > { %v2698_v5 = vpop.f32.mrf.mxu1 }
 0x3b2   : > { %v2796_v19 = vadd.f32 %v2795_v1, %v2698_v5 }
 0x3b4   : > { %v2838_v12 = vadd.f32 %v4816_v60, %v2796_v19 }
 0x3b6   : > { %2854 = vst [vmem:[%s4822_s24 + $0x8] sm:$0xff] %v2838_v12 }
 0x3b9   : > { %v2701_v48 = vpop.f32.mrf.mxu1  ;;  %v2363_v35 = vpop.permute.xlu0 %2362 }
 0x3ba   : > { %v2799_v21 = vadd.f32 %v2798_v39, %v2701_v48  ;;  %v2380_v2 = vmul.f32 %v2363_v35, %v4747_v0 }
 0x3bc   : > { %v2839_v62 = vadd.f32 %v4816_v60, %v2799_v21  ;;  %v2525_v31 = vmul.f32 %v4629_v24, %v2380_v2 }
 0x3be   : > { %2855 = vst [vmem:[%s4822_s24 + $0x10] sm:$0xff] %v2839_v62  ;;  %v2541_v33 = vadd.f32 %v2525_v31, %v2508_v26 }
 0x3c0   : > { %v2598_v55 = vpack.c.bf16 %v2541_v33, %v2540_v10 }
 0x3c1   : > { %v2703_v49 = vpop.f32.mrf.mxu1 }
 0x3c2   : > { %v2801_v38 = vadd.f32 %v2800_v14, %v2703_v49  ;;  %2827 = vmatmul.bf16.gmra.mxu3 %v2598_v55 }
 0x3c3   : > { %v2475_v40 = vpop.permute.xlu2 %2474 }
 0x3c4   : > { %v2840_v22 = vadd.f32 %v4816_v60, %v2801_v38  ;;  %v2492_v50 = vmul.f32 %v2475_v40, %v4772_v17 }
 0x3c6   : > { %2856 = vst [vmem:[%s4822_s24 + $0x18] sm:$0xff] %v2840_v22  ;;  %v2803_v0 = vpop.f32.mrf.mxu3  ;;  %v2574_v20 = vmul.f32 %v4722_v15, %v2492_v50 }
 0x3c8   : > { %v2590_v47 = vadd.f32 %v2574_v20, %v2557_v36 }
 0x3ce   : > { %v2805_v24 = vpop.f32.mrf.mxu3 }
 0x3d1   : > { %v2706_v11 = vpop.f32.mrf.mxu1 }
 0x3d2   : > { %v2804_v43 = vadd.f32 %v2803_v0, %v2706_v11 }
 0x3d4   : > { %v2841_v27 = vadd.f32 %v4816_v60, %v2804_v43 }
 0x3d6   : > { %2857 = vst [vmem:[%s4822_s24 + $0x20] sm:$0xff] %v2841_v27 }
 0x3d9   : > { %v2708_v59 = vpop.f32.mrf.mxu1 }
 0x3da   : > { %v2806_v41 = vadd.f32 %v2805_v24, %v2708_v59 }
 0x3dc   : > { %v2842_v53 = vadd.f32 %v4816_v60, %v2806_v41 }
 0x3de   : > { %2858 = vst [vmem:[%s4822_s24 + $0x28] sm:$0xff] %v2842_v53 }
 0x3df   : > { %v2808_v16 = vpop.f32.mrf.mxu3 }
 0x3e1   : > { %v2711_v3 = vpop.f32.mrf.mxu1 }
 0x3e2   : > { %v2809_v8 = vadd.f32 %v2808_v16, %v2711_v3  ;;  %v2470_v18 = vpop.permute.xlu1 %2469 }
 0x3e3   : > { %v2491_v34 = vmul.f32 %v2470_v18, %v4780_v42 }
 0x3e4   : > { %v2843_v28 = vadd.f32 %v4816_v60, %v2809_v8 }
 0x3e5   : > { %v2573_v61 = vmul.f32 %v4722_v15, %v2491_v34 }
 0x3e6   : > { %2859 = vst [vmem:[%s4822_s24 + $0x30] sm:$0xff] %v2843_v28 }
 0x3e7   : > { %v2589_v63 = vadd.f32 %v2573_v61, %v2556_v57  ;;  %v2810_v17 = vpop.f32.mrf.mxu3 }
 0x3e9   : > { %v2713_v37 = vpop.f32.mrf.mxu1  ;;  %v2622_v58 = vpack.c.bf16 %v2590_v47, %v2589_v63 }
 0x3ea   : > { %v2811_v6 = vadd.f32 %v2810_v17, %v2713_v37 }
 0x3eb   : > { %2730 = vmatmul.bf16.gmra.mxu1 %v2622_v58 }
 0x3ec   : > { %v2844_v30 = vadd.f32 %v4816_v60, %v2811_v6 }
 0x3ee   : > { %2860 = vst [vmem:[%s4822_s24 + $0x38] sm:$0xff] %v2844_v30 }
 0x3ef   : > { %v2813_v42 = vpop.f32.mrf.mxu3 }
 0x3f3   : > { %v2716_v9 = vpop.f32.mrf.mxu1 }
 0x3f4   : > { %v2814_v23 = vadd.f32 %v2813_v42, %v2716_v9 }
 0x3f6   : > { %v2845_v56 = vadd.f32 %v4816_v60, %v2814_v23 }
 0x3f7   : > { %v2815_v15 = vpop.f32.mrf.mxu3 }
 0x3f8   : > { %2861 = vst [vmem:[%s4822_s24 + $0x40] sm:$0xff] %v2845_v56 }
 0x3fb   : > { %v2718_v46 = vpop.f32.mrf.mxu1 }
 0x3fc   : > { %v2816_v52 = vadd.f32 %v2815_v15, %v2718_v46 }
 0x3fe   : > { %v2846_v29 = vadd.f32 %v4816_v60, %v2816_v52 }
 0x400   : > { %2862 = vst [vmem:[%s4822_s24 + $0x48] sm:$0xff] %v2846_v29 }
 0x401   : > { %v2818_v51 = vpop.f32.mrf.mxu3 }
 0x403   : > { %v2721_v45 = vpop.f32.mrf.mxu1 }
 0x404   : > { %v2819_v32 = vadd.f32 %v2818_v51, %v2721_v45 }
 0x406   : > { %v2847_v4 = vadd.f32 %v4816_v60, %v2819_v32 }
 0x408   : > { %2863 = vst [vmem:[%s4822_s24 + $0x50] sm:$0xff] %v2847_v4 }
 0x409   : > { %v2820_v7 = vpop.f32.mrf.mxu3 }
 0x40b   : > { %v2723_v1 = vpop.f32.mrf.mxu1 }
 0x40c   : > { %v2821_v5 = vadd.f32 %v2820_v7, %v2723_v1 }
 0x40e   : > { %v2848_v19 = vadd.f32 %v4816_v60, %v2821_v5 }
 0x410   : > { %2864 = vst [vmem:[%s4822_s24 + $0x58] sm:$0xff] %v2848_v19 }
 0x411   : > { %v2823_v13 = vpop.f32.mrf.mxu3 }
 0x413   : > { %v2726_v12 = vpop.f32.mrf.mxu1 }
 0x414   : > { %v2824_v44 = vadd.f32 %v2823_v13, %v2726_v12 }
 0x416   : > { %v2849_v39 = vadd.f32 %v4816_v60, %v2824_v44 }
 0x418   : > { %2865 = vst [vmem:[%s4822_s24 + $0x60] sm:$0xff] %v2849_v39 }
 0x419   : > { %v2825_v48 = vpop.f32.mrf.mxu3 }
 0x41b   : > { %v2728_v35 = vpop.f32.mrf.mxu1 }
 0x41c   : > { %v2826_v25 = vadd.f32 %v2825_v48, %v2728_v35 }
 0x41e   : > { %v2850_v21 = vadd.f32 %v4816_v60, %v2826_v25 }
 0x420   : > { %2866 = vst [vmem:[%s4822_s24 + $0x68] sm:$0xff] %v2850_v21 }
 0x445   : > { %v2828_v2 = vpop.f32.mrf.mxu3 }
 0x44d   : > { %v2830_v31 = vpop.f32.mrf.mxu3 }
 0x468   : > { %v2731_v54 = vpop.f32.mrf.mxu1 }
 0x469   : > { %v2829_v26 = vadd.f32 %v2828_v2, %v2731_v54 }
 0x46b   : > { %v2851_v62 = vadd.f32 %v4816_v60, %v2829_v26 }
 0x46d   : > { %2867 = vst [vmem:[%s4822_s24 + $0x70] sm:$0xff] %v2851_v62 }
 0x470   : > { %v2733_v10 = vpop.f32.mrf.mxu1 }
 0x471   : > { %v2831_v33 = vadd.f32 %v2830_v31, %v2733_v10 }
 0x473   : > { %v2852_v55 = vadd.f32 %v4816_v60, %v2831_v33 }
 0x475   : > { %2868 = vst [vmem:[%s4822_s24 + $0x78] sm:$0xff] %v2852_v55 }
 0x476 PF: > { %s23_s23 = sadd.s32 1, %s3758_s23   ;;  %s5008_s21 = smov %s3754_s22 }
 0x477   : > { %p20_p8 = scmp.ge.s32.totalorder %s23_s23, 4   ;;  %s5009_s22 = smov %s5011_s25 }
 0x479   :  { %22 = sbr.rel (!%p20_p8) target bundleno = 2 (0x2), region = 132 }
 0x47e   :  { %2899 = vsyncpa [#allocation7], 1 }
 0x47f   :  { %2901 = vsyncpa [#allocation7 + $0x1], 1 }

</bundles_post_ra>
